<compile_context>
chip_gen: v7x
topology: tpu7x:2x2x1
jax: 0.10.0
libtpu: 0.0.40
codegen_flags: <defaults>
</compile_context>

<pallas_src>
import functools

import jax
import jax.numpy as jnp
from jax.experimental import pallas as pl
from jax.experimental.pallas import tpu as pltpu

GP = 128            # padded lane width of one gate block: [fwd H | pad | bwd H | pad]
HALF = GP // 2      # lane offset of the backward sub-block inside a gate block


def _vmem_spec():
    return pl.BlockSpec(memory_space=pltpu.MemorySpace.VMEM)


def _round_up(n, m):
    return ((n + m - 1) // m) * m


# ----------------------------------------------------------------------------
# Fused conv3x3 + bias + ReLU + max-pool kernel (single lane-dense GEMM,
# pool offsets folded into the lane dimension)
# ----------------------------------------------------------------------------

def _conv_pool_kernel(p_ref, w_ref, b_ref, o_ref):
    # p_ref: (K, P*Np) bf16 im2col patches, pool-offset p occupies lanes [p*Np,(p+1)*Np)
    # w_ref: (Cout, K) bf16, b_ref: (Cout, 1) f32, o_ref: (Cout, Np) bf16
    np_ = o_ref.shape[1]
    P = p_ref.shape[1] // np_
    r = jnp.dot(w_ref[...], p_ref[...], preferred_element_type=jnp.float32)
    m = r[:, 0:np_]
    for p in range(1, P):                      # static unroll; slices are 128-lane aligned
        m = jnp.maximum(m, r[:, p * np_:(p + 1) * np_])
    # maxpool(relu(conv + b)) == relu(max(conv) + b): bias/relu are monotonic.
    o_ref[...] = jnp.maximum(m + b_ref[...], 0.0).astype(o_ref.dtype)


def _im2col_pool(x_cbhw, ph, pw):
    """(C,B,H,W) -> ((C*9, P*Np), Np): SAME-padded 3x3 patches with the P=ph*pw
    pool-window offsets folded into the (128-padded) lane dimension."""
    C, B, H, W = x_cbhw.shape
    Ho, Wo = H // ph, W // pw
    N = B * Ho * Wo
    Np = _round_up(N, 128)
    xp = jnp.pad(x_cbhw, ((0, 0), (0, 0), (1, 1), (1, 1)))
    taps = [xp[:, :, ki:ki + H, kj:kj + W] for ki in range(3) for kj in range(3)]
    pat = jnp.stack(taps, axis=0).reshape(3, 3, C, B, Ho, ph, Wo, pw)
    pat = pat.transpose(2, 0, 1, 5, 7, 3, 4, 6)          # (C,ki,kj,pi,pj,B,Ho,Wo)
    pat = pat.reshape(C * 9, ph * pw, N)
    if Np != N:
        pat = jnp.pad(pat, ((0, 0), (0, 0), (0, Np - N)))
    return pat.reshape(C * 9, ph * pw * Np), Np


def conv3x3_relu_pool(x_cbhw, wm, bb, ph, pw):
    """SAME 3x3 conv + bias + ReLU + (ph,pw) max-pool, channel-major in/out:
    (C,B,H,W) -> (Cout,B,Ho,Wo). One gridless pallas_call, one lane-dense GEMM."""
    # TODO(synk): im2col stays in XLA (cheap at this scale); a fully in-kernel
    # im2col would avoid the patch expansion at production sizes.
    C, B, H, W = x_cbhw.shape
    Cout = wm.shape[0]
    Ho, Wo = H // ph, W // pw
    N = B * Ho * Wo
    pat, Np = _im2col_pool(x_cbhw, ph, pw)
    out = pl.pallas_call(
        _conv_pool_kernel,
        out_shape=jax.ShapeDtypeStruct((Cout, Np), jnp.bfloat16),
        in_specs=[_vmem_spec()] * 3,
        out_specs=_vmem_spec(),
    )(pat, wm, bb)
    return out[:, :N].reshape(Cout, B, Ho, Wo)


# ----------------------------------------------------------------------------
# Fully fused 2-layer BidirectionalLSTM stack in a single pallas_call
# ----------------------------------------------------------------------------

def _blstm2_kernel(x_ref, xr_ref,
                   wihf1, wihb1, whh1, bg1, wof1, wob1, bo1,
                   wihf2, wihb2, whh2, bg2, wof2, wob2, bo2,
                   o_ref, xg_sc, seq_s, seq_r, h_sc, c_sc):
    T, B, _ = seq_s.shape
    TB = T * B

    def fdot(a, b):
        return jnp.dot(a, b, preferred_element_type=jnp.float32)

    def project(a_nat, a_rev, wf_ref, wb_ref, bg_ref):
        # Merged fwd/bwd gate pre-activations for the whole sequence: fwd gate
        # columns read the natural-time input, bwd columns the time-reversed one.
        return fdot(a_nat, wf_ref[...]) + fdot(a_rev, wb_ref[...]) + bg_ref[...]

    def recurrence(whh_ref):
        h_sc[...] = jnp.zeros_like(h_sc)
        c_sc[...] = jnp.zeros_like(c_sc)
        whh = whh_ref[...]

        @pl.loop(0, T)
        def _(s):
            rec = fdot(h_sc[...].astype(jnp.bfloat16), whh)        # (B, 4*GP)
            gates = xg_sc[s] + rec
            sg = jax.nn.sigmoid(gates[:, 0:3 * GP])                # [i | f | o]
            g = jnp.tanh(gates[:, 3 * GP:4 * GP])
            c = sg[:, GP:2 * GP] * c_sc[...] + sg[:, 0:GP] * g
            h = sg[:, 2 * GP:3 * GP] * jnp.tanh(c)                 # [h_f |0| h_b |0]
            c_sc[...] = c
            h_sc[...] = h
            hb = h.astype(jnp.bfloat16)
            seq_s[s] = hb              # fwd half belongs to output time s
            seq_r[T - 1 - s] = hb      # bwd half belongs to output time T-1-s

    # ---------------- layer 1 ----------------
    xg_sc[...] = project(x_ref[...], xr_ref[...], wihf1, wihb1, bg1).reshape(T, B, 4 * GP)
    recurrence(whh1)
    ss = seq_s[...].reshape(TB, GP)
    sr = seq_r[...].reshape(TB, GP)
    # wof/wob only read the fwd / bwd sub-lanes, so swapping ss<->sr yields the
    # time-reversed layer-1 output with no flips.
    a_nat = fdot(ss, wof1[...]) + fdot(sr, wob1[...]) + bo1[...]
    a_rev = fdot(sr, wof1[...]) + fdot(ss, wob1[...]) + bo1[...]

    # ---------------- layer 2 ----------------
    xg_sc[...] = project(a_nat.astype(jnp.bfloat16), a_rev.astype(jnp.bfloat16),
                         wihf2, wihb2, bg2).reshape(T, B, 4 * GP)
    recurrence(whh2)
    ss = seq_s[...].reshape(TB, GP)
    sr = seq_r[...].reshape(TB, GP)
    o_ref[...] = fdot(ss, wof2[...]) + fdot(sr, wob2[...]) + bo2[...]


def blstm_stack(c_feat, p1, p2, n_class):
    """Two stacked BidirectionalLSTM layers, fully fused: (T,B,nIn) -> (T,B,n_class)."""
    # TODO(synk): on v7x a batch 'parallel' grid axis could engage the 2nd
    # TensorCore; skipped here (B=2 is already below one sublane tile).
    T, B, _ = c_feat.shape
    x2 = c_feat.reshape(T * B, -1).astype(jnp.bfloat16)
    x2r = c_feat[::-1].reshape(T * B, -1).astype(jnp.bfloat16)     # time-reversed input
    NPO = p2["wof"].shape[1]                                        # 128-padded class dim
    out = pl.pallas_call(
        _blstm2_kernel,
        out_shape=jax.ShapeDtypeStruct((T * B, NPO), jnp.float32),
        in_specs=[_vmem_spec()] * 16,
        out_specs=_vmem_spec(),
        scratch_shapes=[pltpu.VMEM((T, B, 4 * GP), jnp.float32),   # merged gate pre-acts
                        pltpu.VMEM((T, B, GP), jnp.bfloat16),      # h, loop-step order
                        pltpu.VMEM((T, B, GP), jnp.bfloat16),      # h, reversed order
                        pltpu.VMEM((B, GP), jnp.float32),          # h state
                        pltpu.VMEM((B, GP), jnp.float32)],         # c state
    )(x2, x2r,
      p1["wih_f"], p1["wih_b"], p1["whh"], p1["bg"], p1["wof"], p1["wob"], p1["bo"],
      p2["wih_f"], p2["wih_b"], p2["whh"], p2["bg"], p2["wof"], p2["wob"], p2["bo"])
    return out[:, :n_class].reshape(T, B, n_class)


# ----------------------------------------------------------------------------
# One-time weight packing (outside jit)
# ----------------------------------------------------------------------------

def _pack_blstm(p, pad_out):
    """Pack per-direction LSTM weights (PyTorch gate order i,f,g,o) into the
    padded 128-lane gate-block layout, kernel block order [i|f|o|g].  Note: when
    loading real PyTorch weights, transpose w_* and use b = b_ih + b_hh."""
    n_in = p["w_ih_f"].shape[0]
    H = p["w_hh_f"].shape[0]
    n_out = p["w_out"].shape[1]
    assert H <= HALF, "hidden size must fit the padded 128-lane gate block"

    wih_f = jnp.zeros((n_in, 4 * GP), jnp.float32)
    wih_b = jnp.zeros((n_in, 4 * GP), jnp.float32)
    whh = jnp.zeros((GP, 4 * GP), jnp.float32)
    bg = jnp.zeros((1, 4 * GP), jnp.float32)
    for blk, gi in enumerate((0, 1, 3, 2)):                 # kernel blocks [i|f|o|g]
        c0, sl = blk * GP, slice(gi * H, (gi + 1) * H)
        wih_f = wih_f.at[:, c0:c0 + H].set(p["w_ih_f"][:, sl])
        wih_b = wih_b.at[:, c0 + HALF:c0 + HALF + H].set(p["w_ih_b"][:, sl])
        whh = whh.at[0:H, c0:c0 + H].set(p["w_hh_f"][:, sl])
        whh = whh.at[HALF:HALF + H, c0 + HALF:c0 + HALF + H].set(p["w_hh_b"][:, sl])
        bg = bg.at[0, c0:c0 + H].set(p["b_f"][sl])
        bg = bg.at[0, c0 + HALF:c0 + HALF + H].set(p["b_b"][sl])
    npo = _round_up(n_out, 128) if pad_out else n_out
    wof = jnp.zeros((GP, npo), jnp.float32).at[0:H, 0:n_out].set(p["w_out"][0:H])
    wob = jnp.zeros((GP, npo), jnp.float32).at[HALF:HALF + H, 0:n_out].set(p["w_out"][H:2 * H])
    bo = jnp.zeros((1, npo), jnp.float32).at[0, 0:n_out].set(p["b_out"])
    return {"wih_f": wih_f.astype(jnp.bfloat16), "wih_b": wih_b.astype(jnp.bfloat16),
            "whh": whh.astype(jnp.bfloat16), "bg": bg,
            "wof": wof.astype(jnp.bfloat16), "wob": wob.astype(jnp.bfloat16), "bo": bo}


def pack_params(params):
    """One-time repacking of all weights into kernel layouts (call outside jit)."""
    def conv_pack(w, b):
        return (w.reshape(w.shape[0], -1).astype(jnp.bfloat16),
                b.reshape(-1, 1).astype(jnp.float32))
    pk = {}
    for i in (1, 2, 3):
        pk[f"conv{i}_w"], pk[f"conv{i}_b"] = conv_pack(params[f"conv{i}_w"],
                                                       params[f"conv{i}_b"])
    pk["blstm1"] = _pack_blstm(params["blstm1"], pad_out=False)
    pk["blstm2"] = _pack_blstm(params["blstm2"], pad_out=True)   # lane-dense final store
    return pk


# ----------------------------------------------------------------------------
# CRANN forward
# ----------------------------------------------------------------------------

def crann_forward(x, pk, *, n_class):
    """CRANN.forward: cnn(x) -> assert h==1 -> squeeze(2) -> permute(2,0,1) -> rnn."""
    # TODO(synk): data_parallel / nn.parallel multi-GPU dispatch has no TPU-Pallas
    # equivalent; it is an identity wrapper here (single-core execution).
    f = jnp.transpose(x, (1, 0, 2, 3)).astype(jnp.bfloat16)              # (Cin,B,H,W)
    f = conv3x3_relu_pool(f, pk["conv1_w"], pk["conv1_b"], 2, 2)         # H 16->8, W 32->16
    f = conv3x3_relu_pool(f, pk["conv2_w"], pk["conv2_b"], 2, 2)         # H 8->4,  W 16->8
    f = conv3x3_relu_pool(f, pk["conv3_w"], pk["conv3_b"], 4, 1)         # H 4->1,  W 8->8
    c, b, h, w = f.shape
    assert h == 1, "the height of the conv must be 1"
    c_feat = f.reshape(c, b, w)                    # squeeze(2) in channel-major layout
    c_feat = jnp.transpose(c_feat, (2, 1, 0))      # == (B,C,W).permute(2,0,1) -> (T,B,C)
    return blstm_stack(c_feat, pk["blstm1"], pk["blstm2"], n_class)      # (T,B,n_class)


# ----------------------------------------------------------------------------
# Deterministic parameter construction
# ----------------------------------------------------------------------------

def make_blstm_params(key, n_in, n_hidden, n_out, scale=0.1):
    ks = jax.random.split(key, 8)
    return {
        "w_ih_f": jax.random.normal(ks[0], (n_in, 4 * n_hidden), jnp.float32) * scale,
        "w_hh_f": jax.random.normal(ks[1], (n_hidden, 4 * n_hidden), jnp.float32) * scale,
        "b_f":    jax.random.normal(ks[2], (4 * n_hidden,), jnp.float32) * scale,
        "w_ih_b": jax.random.normal(ks[3], (n_in, 4 * n_hidden), jnp.float32) * scale,
        "w_hh_b": jax.random.normal(ks[4], (n_hidden, 4 * n_hidden), jnp.float32) * scale,
        "b_b":    jax.random.normal(ks[5], (4 * n_hidden,), jnp.float32) * scale,
        "w_out":  jax.random.normal(ks[6], (2 * n_hidden, n_out), jnp.float32) * scale,
        "b_out":  jax.random.normal(ks[7], (n_out,), jnp.float32) * scale,
    }


def make_params(key, c_in=1, c1=8, c2=16, c3=32, n_hidden=32, n_class=10, scale=0.1):
    ks = jax.random.split(key, 8)
    return {
        "conv1_w": jax.random.normal(ks[0], (c1, c_in, 3, 3), jnp.float32) * scale,
        "conv1_b": jax.random.normal(ks[1], (c1,), jnp.float32) * scale,
        "conv2_w": jax.random.normal(ks[2], (c2, c1, 3, 3), jnp.float32) * scale,
        "conv2_b": jax.random.normal(ks[3], (c2,), jnp.float32) * scale,
        "conv3_w": jax.random.normal(ks[4], (c3, c2, 3, 3), jnp.float32) * scale,
        "conv3_b": jax.random.normal(ks[5], (c3,), jnp.float32) * scale,
        "blstm1": make_blstm_params(ks[6], c3, n_hidden, n_hidden),
        "blstm2": make_blstm_params(ks[7], n_hidden, n_hidden, n_class),
    }


if __name__ == "__main__":
    key = jax.random.PRNGKey(0)
    k_x, k_p = jax.random.split(key)

    B, C_in, H, W = 2, 1, 16, 32          # small OCR-style input (NCHW)
    n_class = 10
    x = jax.random.normal(k_x, (B, C_in, H, W), jnp.float32)
    params = make_params(k_p, n_class=n_class)
    packed = pack_params(params)           # one-time weight packing, outside jit

    fwd = jax.jit(functools.partial(crann_forward, n_class=n_class))
    out = jax.block_until_ready(fwd(x, packed))

    assert out.shape == (8, B, n_class), out.shape      # (T, B, n_class)
    assert bool(jnp.all(jnp.isfinite(out)))
    print("KERNEL_OK")
</pallas_src>

<mosaic_0001>
module attributes {stable_mosaic.version = 11 : i64} {
  func.func @_conv_pool_kernel(%arg0: memref<9x1024xbf16, #tpu.memory_space<vmem>>, %arg1: memref<8x9xbf16, #tpu.memory_space<vmem>>, %arg2: memref<8x1xf32, #tpu.memory_space<vmem>>, %arg3: memref<8x256xbf16, #tpu.memory_space<vmem>>) attributes {dimension_semantics = [], scalar_prefetch = 0 : i64, scratch_operands = 0 : i64, tpu.core_type = #tpu.core_type<tc>} {
    %c0 = arith.constant 0 : index
    %c0_0 = arith.constant 0 : index
    %0 = vector.load %arg1[%c0, %c0_0] : memref<8x9xbf16, #tpu.memory_space<vmem>>, vector<8x9xbf16>
    %c0_1 = arith.constant 0 : index
    %c0_2 = arith.constant 0 : index
    %1 = vector.load %arg0[%c0_1, %c0_2] : memref<9x1024xbf16, #tpu.memory_space<vmem>>, vector<9x1024xbf16>
    %cst = arith.constant dense<0.000000e+00> : vector<8x1024xf32>
    %2 = tpu.matmul %0, %1, %cst {dimension_numbers = #tpu.dot_dimension_numbers<[1], [0], [0], [1], [0, 0, 1, 1], [], []>} : vector<8x9xbf16>, vector<9x1024xbf16>, vector<8x1024xf32> -> vector<8x1024xf32>
    %3 = vector.extract_strided_slice %2 {offsets = [0, 0], sizes = [8, 256], strides = [1, 1]} : vector<8x1024xf32> to vector<8x256xf32>
    %4 = vector.extract_strided_slice %2 {offsets = [0, 256], sizes = [8, 256], strides = [1, 1]} : vector<8x1024xf32> to vector<8x256xf32>
    %5 = arith.maximumf %3, %4 : vector<8x256xf32>
    %6 = vector.extract_strided_slice %2 {offsets = [0, 512], sizes = [8, 256], strides = [1, 1]} : vector<8x1024xf32> to vector<8x256xf32>
    %7 = arith.maximumf %5, %6 : vector<8x256xf32>
    %8 = vector.extract_strided_slice %2 {offsets = [0, 768], sizes = [8, 256], strides = [1, 1]} : vector<8x1024xf32> to vector<8x256xf32>
    %9 = arith.maximumf %7, %8 : vector<8x256xf32>
    %c0_3 = arith.constant 0 : index
    %c0_4 = arith.constant 0 : index
    %10 = vector.load %arg2[%c0_3, %c0_4] : memref<8x1xf32, #tpu.memory_space<vmem>>, vector<8x1xf32>
    %11 = vector.broadcast %10 : vector<8x1xf32> to vector<8x256xf32>
    %12 = arith.addf %9, %11 : vector<8x256xf32>
    %cst_5 = arith.constant 0.000000e+00 : f32
    %13 = vector.broadcast %cst_5 : f32 to vector<8x256xf32>
    %14 = arith.maximumf %12, %13 : vector<8x256xf32>
    %15 = arith.truncf %14 : vector<8x256xf32> to vector<8x256xbf16>
    %c0_6 = arith.constant 0 : index
    %c0_7 = arith.constant 0 : index
    %16 = vector.load %arg3[%c0_6, %c0_7] : memref<8x256xbf16, #tpu.memory_space<vmem>>, vector<8x256xbf16>
    tpu.vector_store %arg3[%c0_6, %c0_7], %15 {strides = array<i32>} : memref<8x256xbf16, #tpu.memory_space<vmem>>, vector<8x256xbf16>,
    return
  }
}

module attributes {stable_mosaic.version = 11 : i64} {
  func.func @_conv_pool_kernel(%arg0: memref<72x512xbf16, #tpu.memory_space<vmem>>, %arg1: memref<16x72xbf16, #tpu.memory_space<vmem>>, %arg2: memref<16x1xf32, #tpu.memory_space<vmem>>, %arg3: memref<16x128xbf16, #tpu.memory_space<vmem>>) attributes {dimension_semantics = [], scalar_prefetch = 0 : i64, scratch_operands = 0 : i64, tpu.core_type = #tpu.core_type<tc>} {
    %c0 = arith.constant 0 : index
    %c0_0 = arith.constant 0 : index
    %0 = vector.load %arg1[%c0, %c0_0] : memref<16x72xbf16, #tpu.memory_space<vmem>>, vector<16x72xbf16>
    %c0_1 = arith.constant 0 : index
    %c0_2 = arith.constant 0 : index
    %1 = vector.load %arg0[%c0_1, %c0_2] : memref<72x512xbf16, #tpu.memory_space<vmem>>, vector<72x512xbf16>
    %cst = arith.constant dense<0.000000e+00> : vector<16x512xf32>
    %2 = tpu.matmul %0, %1, %cst {dimension_numbers = #tpu.dot_dimension_numbers<[1], [0], [0], [1], [0, 0, 1, 1], [], []>} : vector<16x72xbf16>, vector<72x512xbf16>, vector<16x512xf32> -> vector<16x512xf32>
    %3 = vector.extract_strided_slice %2 {offsets = [0, 0], sizes = [16, 128], strides = [1, 1]} : vector<16x512xf32> to vector<16x128xf32>
    %4 = vector.extract_strided_slice %2 {offsets = [0, 128], sizes = [16, 128], strides = [1, 1]} : vector<16x512xf32> to vector<16x128xf32>
    %5 = arith.maximumf %3, %4 : vector<16x128xf32>
    %6 = vector.extract_strided_slice %2 {offsets = [0, 256], sizes = [16, 128], strides = [1, 1]} : vector<16x512xf32> to vector<16x128xf32>
    %7 = arith.maximumf %5, %6 : vector<16x128xf32>
    %8 = vector.extract_strided_slice %2 {offsets = [0, 384], sizes = [16, 128], strides = [1, 1]} : vector<16x512xf32> to vector<16x128xf32>
    %9 = arith.maximumf %7, %8 : vector<16x128xf32>
    %c0_3 = arith.constant 0 : index
    %c0_4 = arith.constant 0 : index
    %10 = vector.load %arg2[%c0_3, %c0_4] : memref<16x1xf32, #tpu.memory_space<vmem>>, vector<16x1xf32>
    %11 = vector.broadcast %10 : vector<16x1xf32> to vector<16x128xf32>
    %12 = arith.addf %9, %11 : vector<16x128xf32>
    %cst_5 = arith.constant 0.000000e+00 : f32
    %13 = vector.broadcast %cst_5 : f32 to vector<16x128xf32>
    %14 = arith.maximumf %12, %13 : vector<16x128xf32>
    %15 = arith.truncf %14 : vector<16x128xf32> to vector<16x128xbf16>
    %c0_6 = arith.constant 0 : index
    %c0_7 = arith.constant 0 : index
    %16 = vector.load %arg3[%c0_6, %c0_7] : memref<16x128xbf16, #tpu.memory_space<vmem>>, vector<16x128xbf16>
    tpu.vector_store %arg3[%c0_6, %c0_7], %15 {strides = array<i32>} : memref<16x128xbf16, #tpu.memory_space<vmem>>, vector<16x128xbf16>,
    return
  }
}

module attributes {stable_mosaic.version = 11 : i64} {
  func.func @_conv_pool_kernel(%arg0: memref<144x512xbf16, #tpu.memory_space<vmem>>, %arg1: memref<32x144xbf16, #tpu.memory_space<vmem>>, %arg2: memref<32x1xf32, #tpu.memory_space<vmem>>, %arg3: memref<32x128xbf16, #tpu.memory_space<vmem>>) attributes {dimension_semantics = [], scalar_prefetch = 0 : i64, scratch_operands = 0 : i64, tpu.core_type = #tpu.core_type<tc>} {
    %c0 = arith.constant 0 : index
    %c0_0 = arith.constant 0 : index
    %0 = vector.load %arg1[%c0, %c0_0] : memref<32x144xbf16, #tpu.memory_space<vmem>>, vector<32x144xbf16>
    %c0_1 = arith.constant 0 : index
    %c0_2 = arith.constant 0 : index
    %1 = vector.load %arg0[%c0_1, %c0_2] : memref<144x512xbf16, #tpu.memory_space<vmem>>, vector<144x512xbf16>
    %cst = arith.constant dense<0.000000e+00> : vector<32x512xf32>
    %2 = tpu.matmul %0, %1, %cst {dimension_numbers = #tpu.dot_dimension_numbers<[1], [0], [0], [1], [0, 0, 1, 1], [], []>} : vector<32x144xbf16>, vector<144x512xbf16>, vector<32x512xf32> -> vector<32x512xf32>
    %3 = vector.extract_strided_slice %2 {offsets = [0, 0], sizes = [32, 128], strides = [1, 1]} : vector<32x512xf32> to vector<32x128xf32>
    %4 = vector.extract_strided_slice %2 {offsets = [0, 128], sizes = [32, 128], strides = [1, 1]} : vector<32x512xf32> to vector<32x128xf32>
    %5 = arith.maximumf %3, %4 : vector<32x128xf32>
    %6 = vector.extract_strided_slice %2 {offsets = [0, 256], sizes = [32, 128], strides = [1, 1]} : vector<32x512xf32> to vector<32x128xf32>
    %7 = arith.maximumf %5, %6 : vector<32x128xf32>
    %8 = vector.extract_strided_slice %2 {offsets = [0, 384], sizes = [32, 128], strides = [1, 1]} : vector<32x512xf32> to vector<32x128xf32>
    %9 = arith.maximumf %7, %8 : vector<32x128xf32>
    %c0_3 = arith.constant 0 : index
    %c0_4 = arith.constant 0 : index
    %10 = vector.load %arg2[%c0_3, %c0_4] : memref<32x1xf32, #tpu.memory_space<vmem>>, vector<32x1xf32>
    %11 = vector.broadcast %10 : vector<32x1xf32> to vector<32x128xf32>
    %12 = arith.addf %9, %11 : vector<32x128xf32>
    %cst_5 = arith.constant 0.000000e+00 : f32
    %13 = vector.broadcast %cst_5 : f32 to vector<32x128xf32>
    %14 = arith.maximumf %12, %13 : vector<32x128xf32>
    %15 = arith.truncf %14 : vector<32x128xf32> to vector<32x128xbf16>
    %c0_6 = arith.constant 0 : index
    %c0_7 = arith.constant 0 : index
    %16 = vector.load %arg3[%c0_6, %c0_7] : memref<32x128xbf16, #tpu.memory_space<vmem>>, vector<32x128xbf16>
    tpu.vector_store %arg3[%c0_6, %c0_7], %15 {strides = array<i32>} : memref<32x128xbf16, #tpu.memory_space<vmem>>, vector<32x128xbf16>,
    return
  }
}

module attributes {stable_mosaic.version = 11 : i64} {
  func.func @_blstm2_kernel(%arg0: memref<16x32xbf16, #tpu.memory_space<vmem>>, %arg1: memref<16x32xbf16, #tpu.memory_space<vmem>>, %arg2: memref<32x512xbf16, #tpu.memory_space<vmem>>, %arg3: memref<32x512xbf16, #tpu.memory_space<vmem>>, %arg4: memref<128x512xbf16, #tpu.memory_space<vmem>>, %arg5: memref<1x512xf32, #tpu.memory_space<vmem>>, %arg6: memref<128x32xbf16, #tpu.memory_space<vmem>>, %arg7: memref<128x32xbf16, #tpu.memory_space<vmem>>, %arg8: memref<1x32xf32, #tpu.memory_space<vmem>>, %arg9: memref<32x512xbf16, #tpu.memory_space<vmem>>, %arg10: memref<32x512xbf16, #tpu.memory_space<vmem>>, %arg11: memref<128x512xbf16, #tpu.memory_space<vmem>>, %arg12: memref<1x512xf32, #tpu.memory_space<vmem>>, %arg13: memref<128x128xbf16, #tpu.memory_space<vmem>>, %arg14: memref<128x128xbf16, #tpu.memory_space<vmem>>, %arg15: memref<1x128xf32, #tpu.memory_space<vmem>>, %arg16: memref<16x128xf32, #tpu.memory_space<vmem>>, %arg17: memref<8x2x512xf32, #tpu.memory_space<vmem>>, %arg18: memref<8x2x128xbf16, #tpu.memory_space<vmem>>, %arg19: memref<8x2x128xbf16, #tpu.memory_space<vmem>>, %arg20: memref<2x128xf32, #tpu.memory_space<vmem>>, %arg21: memref<2x128xf32, #tpu.memory_space<vmem>>) attributes {dimension_semantics = [], scalar_prefetch = 0 : i64, scratch_operands = 5 : i64, tpu.core_type = #tpu.core_type<tc>} {
    %c0 = arith.constant 0 : index
    %c0_0 = arith.constant 0 : index
    %0 = vector.load %arg0[%c0, %c0_0] : memref<16x32xbf16, #tpu.memory_space<vmem>>, vector<16x32xbf16>
    %c0_1 = arith.constant 0 : index
    %c0_2 = arith.constant 0 : index
    %1 = vector.load %arg1[%c0_1, %c0_2] : memref<16x32xbf16, #tpu.memory_space<vmem>>, vector<16x32xbf16>
    %c0_3 = arith.constant 0 : index
    %c0_4 = arith.constant 0 : index
    %2 = vector.load %arg2[%c0_3, %c0_4] : memref<32x512xbf16, #tpu.memory_space<vmem>>, vector<32x512xbf16>
    %cst = arith.constant dense<0.000000e+00> : vector<16x512xf32>
    %3 = tpu.matmul %0, %2, %cst {dimension_numbers = #tpu.dot_dimension_numbers<[1], [0], [0], [1], [0, 0, 1, 1], [], []>} : vector<16x32xbf16>, vector<32x512xbf16>, vector<16x512xf32> -> vector<16x512xf32>
    %c0_5 = arith.constant 0 : index
    %c0_6 = arith.constant 0 : index
    %4 = vector.load %arg3[%c0_5, %c0_6] : memref<32x512xbf16, #tpu.memory_space<vmem>>, vector<32x512xbf16>
    %cst_7 = arith.constant dense<0.000000e+00> : vector<16x512xf32>
    %5 = tpu.matmul %1, %4, %cst_7 {dimension_numbers = #tpu.dot_dimension_numbers<[1], [0], [0], [1], [0, 0, 1, 1], [], []>} : vector<16x32xbf16>, vector<32x512xbf16>, vector<16x512xf32> -> vector<16x512xf32>
    %6 = arith.addf %3, %5 : vector<16x512xf32>
    %c0_8 = arith.constant 0 : index
    %c0_9 = arith.constant 0 : index
    %7 = vector.load %arg5[%c0_8, %c0_9] : memref<1x512xf32, #tpu.memory_space<vmem>>, vector<1x512xf32>
    %8 = vector.broadcast %7 : vector<1x512xf32> to vector<16x512xf32>
    %9 = arith.addf %6, %8 : vector<16x512xf32>
    %10 = vector.shape_cast %9 : vector<16x512xf32> to vector<8x2x512xf32>
    %c0_10 = arith.constant 0 : index
    %c0_11 = arith.constant 0 : index
    %c0_12 = arith.constant 0 : index
    %11 = vector.load %arg17[%c0_10, %c0_11, %c0_12] : memref<8x2x512xf32, #tpu.memory_space<vmem>>, vector<8x2x512xf32>
    tpu.vector_store %arg17[%c0_10, %c0_11, %c0_12], %10 {strides = array<i32>} : memref<8x2x512xf32, #tpu.memory_space<vmem>>, vector<8x2x512xf32>,
    %cst_13 = arith.constant 0.000000e+00 : f32
    %12 = vector.broadcast %cst_13 : f32 to vector<2x128xf32>
    %c0_14 = arith.constant 0 : index
    %c0_15 = arith.constant 0 : index
    %13 = vector.load %arg20[%c0_14, %c0_15] : memref<2x128xf32, #tpu.memory_space<vmem>>, vector<2x128xf32>
    tpu.vector_store %arg20[%c0_14, %c0_15], %12 {strides = array<i32>} : memref<2x128xf32, #tpu.memory_space<vmem>>, vector<2x128xf32>,
    %cst_16 = arith.constant 0.000000e+00 : f32
    %14 = vector.broadcast %cst_16 : f32 to vector<2x128xf32>
    %c0_17 = arith.constant 0 : index
    %c0_18 = arith.constant 0 : index
    %15 = vector.load %arg21[%c0_17, %c0_18] : memref<2x128xf32, #tpu.memory_space<vmem>>, vector<2x128xf32>
    tpu.vector_store %arg21[%c0_17, %c0_18], %14 {strides = array<i32>} : memref<2x128xf32, #tpu.memory_space<vmem>>, vector<2x128xf32>,
    %c0_19 = arith.constant 0 : index
    %c0_20 = arith.constant 0 : index
    %16 = vector.load %arg4[%c0_19, %c0_20] : memref<128x512xbf16, #tpu.memory_space<vmem>>, vector<128x512xbf16>
    %c0_i32 = arith.constant 0 : i32
    %c8_i32 = arith.constant 8 : i32
    %17 = arith.addi %c0_i32, %c8_i32 : i32
    %c1_i32 = arith.constant 1 : i32
    scf.for %arg22 = %c0_i32 to %17 step %c1_i32  : i32 {
      %c1_i32_83 = arith.constant 1 : i32
      %69 = arith.muli %arg22, %c1_i32_83 : i32
      %c0_i32_84 = arith.constant 0 : i32
      %70 = arith.addi %c0_i32_84, %69 : i32
      %c0_85 = arith.constant 0 : index
      %c0_86 = arith.constant 0 : index
      %71 = vector.load %arg20[%c0_85, %c0_86] : memref<2x128xf32, #tpu.memory_space<vmem>>, vector<2x128xf32>
      %72 = arith.truncf %71 : vector<2x128xf32> to vector<2x128xbf16>
      %cst_87 = arith.constant dense<0.000000e+00> : vector<2x512xf32>
      %73 = tpu.matmul %72, %16, %cst_87 {dimension_numbers = #tpu.dot_dimension_numbers<[1], [0], [0], [1], [0, 0, 1, 1], [], []>} : vector<2x128xbf16>, vector<128x512xbf16>, vector<2x512xf32> -> vector<2x512xf32>
      %74 = arith.index_cast %70 : i32 to index
      %c0_88 = arith.constant 0 : index
      %c0_89 = arith.constant 0 : index
      %75 = vector.load %arg17[%74, %c0_88, %c0_89] : memref<8x2x512xf32, #tpu.memory_space<vmem>>, vector<1x2x512xf32>
      %76 = vector.shape_cast %75 : vector<1x2x512xf32> to vector<2x512xf32>
      %77 = arith.addf %76, %73 : vector<2x512xf32>
      %78 = vector.extract_strided_slice %77 {offsets = [0, 0], sizes = [2, 384], strides = [1, 1]} : vector<2x512xf32> to vector<2x384xf32>
      %79 = arith.negf %78 : vector<2x384xf32>
      %80 = math.exp %79 : vector<2x384xf32>
      %cst_90 = arith.constant 1.000000e+00 : f32
      %81 = vector.broadcast %cst_90 : f32 to vector<2x384xf32>
      %82 = arith.addf %81, %80 : vector<2x384xf32>
      %83 = arith.divf %81, %82 : vector<2x384xf32>
      %84 = vector.extract_strided_slice %77 {offsets = [0, 384], sizes = [2, 128], strides = [1, 1]} : vector<2x512xf32> to vector<2x128xf32>
      %85 = math.tanh %84 : vector<2x128xf32>
      %86 = vector.extract_strided_slice %83 {offsets = [0, 128], sizes = [2, 128], strides = [1, 1]} : vector<2x384xf32> to vector<2x128xf32>
      %c0_91 = arith.constant 0 : index
      %c0_92 = arith.constant 0 : index
      %87 = vector.load %arg21[%c0_91, %c0_92] : memref<2x128xf32, #tpu.memory_space<vmem>>, vector<2x128xf32>
      %88 = arith.mulf %86, %87 : vector<2x128xf32>
      %89 = vector.extract_strided_slice %83 {offsets = [0, 0], sizes = [2, 128], strides = [1, 1]} : vector<2x384xf32> to vector<2x128xf32>
      %90 = arith.mulf %89, %85 : vector<2x128xf32>
      %91 = arith.addf %88, %90 : vector<2x128xf32>
      %92 = vector.extract_strided_slice %83 {offsets = [0, 256], sizes = [2, 128], strides = [1, 1]} : vector<2x384xf32> to vector<2x128xf32>
      %93 = math.tanh %91 : vector<2x128xf32>
      %94 = arith.mulf %92, %93 : vector<2x128xf32>
      %c0_93 = arith.constant 0 : index
      %c0_94 = arith.constant 0 : index
      %95 = vector.load %arg21[%c0_93, %c0_94] : memref<2x128xf32, #tpu.memory_space<vmem>>, vector<2x128xf32>
      tpu.vector_store %arg21[%c0_93, %c0_94], %91 {strides = array<i32>} : memref<2x128xf32, #tpu.memory_space<vmem>>, vector<2x128xf32>,
      %c0_95 = arith.constant 0 : index
      %c0_96 = arith.constant 0 : index
      %96 = vector.load %arg20[%c0_95, %c0_96] : memref<2x128xf32, #tpu.memory_space<vmem>>, vector<2x128xf32>
      tpu.vector_store %arg20[%c0_95, %c0_96], %94 {strides = array<i32>} : memref<2x128xf32, #tpu.memory_space<vmem>>, vector<2x128xf32>,
      %97 = arith.truncf %94 : vector<2x128xf32> to vector<2x128xbf16>
      %98 = arith.index_cast %70 : i32 to index
      %c0_97 = arith.constant 0 : index
      %c0_98 = arith.constant 0 : index
      %99 = vector.load %arg18[%98, %c0_97, %c0_98] : memref<8x2x128xbf16, #tpu.memory_space<vmem>>, vector<1x2x128xbf16>
      %100 = vector.shape_cast %99 : vector<1x2x128xbf16> to vector<2x128xbf16>
      %101 = vector.shape_cast %97 : vector<2x128xbf16> to vector<1x2x128xbf16>
      tpu.vector_store %arg18[%98, %c0_97, %c0_98], %101 {strides = array<i32>} : memref<8x2x128xbf16, #tpu.memory_space<vmem>>, vector<1x2x128xbf16>,
      %c7_i32 = arith.constant 7 : i32
      %102 = arith.subi %c7_i32, %70 : i32
      %103 = arith.index_cast %102 : i32 to index
      %c0_99 = arith.constant 0 : index
      %c0_100 = arith.constant 0 : index
      %104 = vector.load %arg19[%103, %c0_99, %c0_100] : memref<8x2x128xbf16, #tpu.memory_space<vmem>>, vector<1x2x128xbf16>
      %105 = vector.shape_cast %104 : vector<1x2x128xbf16> to vector<2x128xbf16>
      %106 = vector.shape_cast %97 : vector<2x128xbf16> to vector<1x2x128xbf16>
      tpu.vector_store %arg19[%103, %c0_99, %c0_100], %106 {strides = array<i32>} : memref<8x2x128xbf16, #tpu.memory_space<vmem>>, vector<1x2x128xbf16>,
    }
    %c8_i32_21 = arith.constant 8 : i32
    %c0_22 = arith.constant 0 : index
    %c0_23 = arith.constant 0 : index
    %c0_24 = arith.constant 0 : index
    %18 = vector.load %arg18[%c0_22, %c0_23, %c0_24] : memref<8x2x128xbf16, #tpu.memory_space<vmem>>, vector<8x2x128xbf16>
    %19 = vector.shape_cast %18 : vector<8x2x128xbf16> to vector<16x128xbf16>
    %c0_25 = arith.constant 0 : index
    %c0_26 = arith.constant 0 : index
    %c0_27 = arith.constant 0 : index
    %20 = vector.load %arg19[%c0_25, %c0_26, %c0_27] : memref<8x2x128xbf16, #tpu.memory_space<vmem>>, vector<8x2x128xbf16>
    %21 = vector.shape_cast %20 : vector<8x2x128xbf16> to vector<16x128xbf16>
    %c0_28 = arith.constant 0 : index
    %c0_29 = arith.constant 0 : index
    %22 = vector.load %arg6[%c0_28, %c0_29] : memref<128x32xbf16, #tpu.memory_space<vmem>>, vector<128x32xbf16>
    %cst_30 = arith.constant dense<0.000000e+00> : vector<16x32xf32>
    %23 = tpu.matmul %19, %22, %cst_30 {dimension_numbers = #tpu.dot_dimension_numbers<[1], [0], [0], [1], [0, 0, 1, 1], [], []>} : vector<16x128xbf16>, vector<128x32xbf16>, vector<16x32xf32> -> vector<16x32xf32>
    %c0_31 = arith.constant 0 : index
    %c0_32 = arith.constant 0 : index
    %24 = vector.load %arg7[%c0_31, %c0_32] : memref<128x32xbf16, #tpu.memory_space<vmem>>, vector<128x32xbf16>
    %cst_33 = arith.constant dense<0.000000e+00> : vector<16x32xf32>
    %25 = tpu.matmul %21, %24, %cst_33 {dimension_numbers = #tpu.dot_dimension_numbers<[1], [0], [0], [1], [0, 0, 1, 1], [], []>} : vector<16x128xbf16>, vector<128x32xbf16>, vector<16x32xf32> -> vector<16x32xf32>
    %26 = arith.addf %23, %25 : vector<16x32xf32>
    %c0_34 = arith.constant 0 : index
    %c0_35 = arith.constant 0 : index
    %27 = vector.load %arg8[%c0_34, %c0_35] : memref<1x32xf32, #tpu.memory_space<vmem>>, vector<1x32xf32>
    %28 = vector.broadcast %27 : vector<1x32xf32> to vector<16x32xf32>
    %29 = arith.addf %26, %28 : vector<16x32xf32>
    %c0_36 = arith.constant 0 : index
    %c0_37 = arith.constant 0 : index
    %30 = vector.load %arg6[%c0_36, %c0_37] : memref<128x32xbf16, #tpu.memory_space<vmem>>, vector<128x32xbf16>
    %cst_38 = arith.constant dense<0.000000e+00> : vector<16x32xf32>
    %31 = tpu.matmul %21, %30, %cst_38 {dimension_numbers = #tpu.dot_dimension_numbers<[1], [0], [0], [1], [0, 0, 1, 1], [], []>} : vector<16x128xbf16>, vector<128x32xbf16>, vector<16x32xf32> -> vector<16x32xf32>
    %c0_39 = arith.constant 0 : index
    %c0_40 = arith.constant 0 : index
    %32 = vector.load %arg7[%c0_39, %c0_40] : memref<128x32xbf16, #tpu.memory_space<vmem>>, vector<128x32xbf16>
    %cst_41 = arith.constant dense<0.000000e+00> : vector<16x32xf32>
    %33 = tpu.matmul %19, %32, %cst_41 {dimension_numbers = #tpu.dot_dimension_numbers<[1], [0], [0], [1], [0, 0, 1, 1], [], []>} : vector<16x128xbf16>, vector<128x32xbf16>, vector<16x32xf32> -> vector<16x32xf32>
    %34 = arith.addf %31, %33 : vector<16x32xf32>
    %c0_42 = arith.constant 0 : index
    %c0_43 = arith.constant 0 : index
    %35 = vector.load %arg8[%c0_42, %c0_43] : memref<1x32xf32, #tpu.memory_space<vmem>>, vector<1x32xf32>
    %36 = vector.broadcast %35 : vector<1x32xf32> to vector<16x32xf32>
    %37 = arith.addf %34, %36 : vector<16x32xf32>
    %38 = arith.truncf %29 : vector<16x32xf32> to vector<16x32xbf16>
    %39 = arith.truncf %37 : vector<16x32xf32> to vector<16x32xbf16>
    %c0_44 = arith.constant 0 : index
    %c0_45 = arith.constant 0 : index
    %40 = vector.load %arg9[%c0_44, %c0_45] : memref<32x512xbf16, #tpu.memory_space<vmem>>, vector<32x512xbf16>
    %cst_46 = arith.constant dense<0.000000e+00> : vector<16x512xf32>
    %41 = tpu.matmul %38, %40, %cst_46 {dimension_numbers = #tpu.dot_dimension_numbers<[1], [0], [0], [1], [0, 0, 1, 1], [], []>} : vector<16x32xbf16>, vector<32x512xbf16>, vector<16x512xf32> -> vector<16x512xf32>
    %c0_47 = arith.constant 0 : index
    %c0_48 = arith.constant 0 : index
    %42 = vector.load %arg10[%c0_47, %c0_48] : memref<32x512xbf16, #tpu.memory_space<vmem>>, vector<32x512xbf16>
    %cst_49 = arith.constant dense<0.000000e+00> : vector<16x512xf32>
    %43 = tpu.matmul %39, %42, %cst_49 {dimension_numbers = #tpu.dot_dimension_numbers<[1], [0], [0], [1], [0, 0, 1, 1], [], []>} : vector<16x32xbf16>, vector<32x512xbf16>, vector<16x512xf32> -> vector<16x512xf32>
    %44 = arith.addf %41, %43 : vector<16x512xf32>
    %c0_50 = arith.constant 0 : index
    %c0_51 = arith.constant 0 : index
    %45 = vector.load %arg12[%c0_50, %c0_51] : memref<1x512xf32, #tpu.memory_space<vmem>>, vector<1x512xf32>
    %46 = vector.broadcast %45 : vector<1x512xf32> to vector<16x512xf32>
    %47 = arith.addf %44, %46 : vector<16x512xf32>
    %48 = vector.shape_cast %47 : vector<16x512xf32> to vector<8x2x512xf32>
    %c0_52 = arith.constant 0 : index
    %c0_53 = arith.constant 0 : index
    %c0_54 = arith.constant 0 : index
    %49 = vector.load %arg17[%c0_52, %c0_53, %c0_54] : memref<8x2x512xf32, #tpu.memory_space<vmem>>, vector<8x2x512xf32>
    tpu.vector_store %arg17[%c0_52, %c0_53, %c0_54], %48 {strides = array<i32>} : memref<8x2x512xf32, #tpu.memory_space<vmem>>, vector<8x2x512xf32>,
    %cst_55 = arith.constant 0.000000e+00 : f32
    %50 = vector.broadcast %cst_55 : f32 to vector<2x128xf32>
    %c0_56 = arith.constant 0 : index
    %c0_57 = arith.constant 0 : index
    %51 = vector.load %arg20[%c0_56, %c0_57] : memref<2x128xf32, #tpu.memory_space<vmem>>, vector<2x128xf32>
    tpu.vector_store %arg20[%c0_56, %c0_57], %50 {strides = array<i32>} : memref<2x128xf32, #tpu.memory_space<vmem>>, vector<2x128xf32>,
    %cst_58 = arith.constant 0.000000e+00 : f32
    %52 = vector.broadcast %cst_58 : f32 to vector<2x128xf32>
    %c0_59 = arith.constant 0 : index
    %c0_60 = arith.constant 0 : index
    %53 = vector.load %arg21[%c0_59, %c0_60] : memref<2x128xf32, #tpu.memory_space<vmem>>, vector<2x128xf32>
    tpu.vector_store %arg21[%c0_59, %c0_60], %52 {strides = array<i32>} : memref<2x128xf32, #tpu.memory_space<vmem>>, vector<2x128xf32>,
    %c0_61 = arith.constant 0 : index
    %c0_62 = arith.constant 0 : index
    %54 = vector.load %arg11[%c0_61, %c0_62] : memref<128x512xbf16, #tpu.memory_space<vmem>>, vector<128x512xbf16>
    %c0_i32_63 = arith.constant 0 : i32
    %c8_i32_64 = arith.constant 8 : i32
    %55 = arith.addi %c0_i32_63, %c8_i32_64 : i32
    %c1_i32_65 = arith.constant 1 : i32
    scf.for %arg22 = %c0_i32_63 to %55 step %c1_i32_65  : i32 {
      %c1_i32_83 = arith.constant 1 : i32
      %69 = arith.muli %arg22, %c1_i32_83 : i32
      %c0_i32_84 = arith.constant 0 : i32
      %70 = arith.addi %c0_i32_84, %69 : i32
      %c0_85 = arith.constant 0 : index
      %c0_86 = arith.constant 0 : index
      %71 = vector.load %arg20[%c0_85, %c0_86] : memref<2x128xf32, #tpu.memory_space<vmem>>, vector<2x128xf32>
      %72 = arith.truncf %71 : vector<2x128xf32> to vector<2x128xbf16>
      %cst_87 = arith.constant dense<0.000000e+00> : vector<2x512xf32>
      %73 = tpu.matmul %72, %54, %cst_87 {dimension_numbers = #tpu.dot_dimension_numbers<[1], [0], [0], [1], [0, 0, 1, 1], [], []>} : vector<2x128xbf16>, vector<128x512xbf16>, vector<2x512xf32> -> vector<2x512xf32>
      %74 = arith.index_cast %70 : i32 to index
      %c0_88 = arith.constant 0 : index
      %c0_89 = arith.constant 0 : index
      %75 = vector.load %arg17[%74, %c0_88, %c0_89] : memref<8x2x512xf32, #tpu.memory_space<vmem>>, vector<1x2x512xf32>
      %76 = vector.shape_cast %75 : vector<1x2x512xf32> to vector<2x512xf32>
      %77 = arith.addf %76, %73 : vector<2x512xf32>
      %78 = vector.extract_strided_slice %77 {offsets = [0, 0], sizes = [2, 384], strides = [1, 1]} : vector<2x512xf32> to vector<2x384xf32>
      %79 = arith.negf %78 : vector<2x384xf32>
      %80 = math.exp %79 : vector<2x384xf32>
      %cst_90 = arith.constant 1.000000e+00 : f32
      %81 = vector.broadcast %cst_90 : f32 to vector<2x384xf32>
      %82 = arith.addf %81, %80 : vector<2x384xf32>
      %83 = arith.divf %81, %82 : vector<2x384xf32>
      %84 = vector.extract_strided_slice %77 {offsets = [0, 384], sizes = [2, 128], strides = [1, 1]} : vector<2x512xf32> to vector<2x128xf32>
      %85 = math.tanh %84 : vector<2x128xf32>
      %86 = vector.extract_strided_slice %83 {offsets = [0, 128], sizes = [2, 128], strides = [1, 1]} : vector<2x384xf32> to vector<2x128xf32>
      %c0_91 = arith.constant 0 : index
      %c0_92 = arith.constant 0 : index
      %87 = vector.load %arg21[%c0_91, %c0_92] : memref<2x128xf32, #tpu.memory_space<vmem>>, vector<2x128xf32>
      %88 = arith.mulf %86, %87 : vector<2x128xf32>
      %89 = vector.extract_strided_slice %83 {offsets = [0, 0], sizes = [2, 128], strides = [1, 1]} : vector<2x384xf32> to vector<2x128xf32>
      %90 = arith.mulf %89, %85 : vector<2x128xf32>
      %91 = arith.addf %88, %90 : vector<2x128xf32>
      %92 = vector.extract_strided_slice %83 {offsets = [0, 256], sizes = [2, 128], strides = [1, 1]} : vector<2x384xf32> to vector<2x128xf32>
      %93 = math.tanh %91 : vector<2x128xf32>
      %94 = arith.mulf %92, %93 : vector<2x128xf32>
      %c0_93 = arith.constant 0 : index
      %c0_94 = arith.constant 0 : index
      %95 = vector.load %arg21[%c0_93, %c0_94] : memref<2x128xf32, #tpu.memory_space<vmem>>, vector<2x128xf32>
      tpu.vector_store %arg21[%c0_93, %c0_94], %91 {strides = array<i32>} : memref<2x128xf32, #tpu.memory_space<vmem>>, vector<2x128xf32>,
      %c0_95 = arith.constant 0 : index
      %c0_96 = arith.constant 0 : index
      %96 = vector.load %arg20[%c0_95, %c0_96] : memref<2x128xf32, #tpu.memory_space<vmem>>, vector<2x128xf32>
      tpu.vector_store %arg20[%c0_95, %c0_96], %94 {strides = array<i32>} : memref<2x128xf32, #tpu.memory_space<vmem>>, vector<2x128xf32>,
      %97 = arith.truncf %94 : vector<2x128xf32> to vector<2x128xbf16>
      %98 = arith.index_cast %70 : i32 to index
      %c0_97 = arith.constant 0 : index
      %c0_98 = arith.constant 0 : index
      %99 = vector.load %arg18[%98, %c0_97, %c0_98] : memref<8x2x128xbf16, #tpu.memory_space<vmem>>, vector<1x2x128xbf16>
      %100 = vector.shape_cast %99 : vector<1x2x128xbf16> to vector<2x128xbf16>
      %101 = vector.shape_cast %97 : vector<2x128xbf16> to vector<1x2x128xbf16>
      tpu.vector_store %arg18[%98, %c0_97, %c0_98], %101 {strides = array<i32>} : memref<8x2x128xbf16, #tpu.memory_space<vmem>>, vector<1x2x128xbf16>,
      %c7_i32 = arith.constant 7 : i32
      %102 = arith.subi %c7_i32, %70 : i32
      %103 = arith.index_cast %102 : i32 to index
      %c0_99 = arith.constant 0 : index
      %c0_100 = arith.constant 0 : index
      %104 = vector.load %arg19[%103, %c0_99, %c0_100] : memref<8x2x128xbf16, #tpu.memory_space<vmem>>, vector<1x2x128xbf16>
      %105 = vector.shape_cast %104 : vector<1x2x128xbf16> to vector<2x128xbf16>
      %106 = vector.shape_cast %97 : vector<2x128xbf16> to vector<1x2x128xbf16>
      tpu.vector_store %arg19[%103, %c0_99, %c0_100], %106 {strides = array<i32>} : memref<8x2x128xbf16, #tpu.memory_space<vmem>>, vector<1x2x128xbf16>,
    }
    %c8_i32_66 = arith.constant 8 : i32
    %c0_67 = arith.constant 0 : index
    %c0_68 = arith.constant 0 : index
    %c0_69 = arith.constant 0 : index
    %56 = vector.load %arg18[%c0_67, %c0_68, %c0_69] : memref<8x2x128xbf16, #tpu.memory_space<vmem>>, vector<8x2x128xbf16>
    %57 = vector.shape_cast %56 : vector<8x2x128xbf16> to vector<16x128xbf16>
    %c0_70 = arith.constant 0 : index
    %c0_71 = arith.constant 0 : index
    %c0_72 = arith.constant 0 : index
    %58 = vector.load %arg19[%c0_70, %c0_71, %c0_72] : memref<8x2x128xbf16, #tpu.memory_space<vmem>>, vector<8x2x128xbf16>
    %59 = vector.shape_cast %58 : vector<8x2x128xbf16> to vector<16x128xbf16>
    %c0_73 = arith.constant 0 : index
    %c0_74 = arith.constant 0 : index
    %60 = vector.load %arg13[%c0_73, %c0_74] : memref<128x128xbf16, #tpu.memory_space<vmem>>, vector<128x128xbf16>
    %cst_75 = arith.constant dense<0.000000e+00> : vector<16x128xf32>
    %61 = tpu.matmul %57, %60, %cst_75 {dimension_numbers = #tpu.dot_dimension_numbers<[1], [0], [0], [1], [0, 0, 1, 1], [], []>} : vector<16x128xbf16>, vector<128x128xbf16>, vector<16x128xf32> -> vector<16x128xf32>
    %c0_76 = arith.constant 0 : index
    %c0_77 = arith.constant 0 : index
    %62 = vector.load %arg14[%c0_76, %c0_77] : memref<128x128xbf16, #tpu.memory_space<vmem>>, vector<128x128xbf16>
    %cst_78 = arith.constant dense<0.000000e+00> : vector<16x128xf32>
    %63 = tpu.matmul %59, %62, %cst_78 {dimension_numbers = #tpu.dot_dimension_numbers<[1], [0], [0], [1], [0, 0, 1, 1], [], []>} : vector<16x128xbf16>, vector<128x128xbf16>, vector<16x128xf32> -> vector<16x128xf32>
    %64 = arith.addf %61, %63 : vector<16x128xf32>
    %c0_79 = arith.constant 0 : index
    %c0_80 = arith.constant 0 : index
    %65 = vector.load %arg15[%c0_79, %c0_80] : memref<1x128xf32, #tpu.memory_space<vmem>>, vector<1x128xf32>
    %66 = vector.broadcast %65 : vector<1x128xf32> to vector<16x128xf32>
    %67 = arith.addf %64, %66 : vector<16x128xf32>
    %c0_81 = arith.constant 0 : index
    %c0_82 = arith.constant 0 : index
    %68 = vector.load %arg16[%c0_81, %c0_82] : memref<16x128xf32, #tpu.memory_space<vmem>>, vector<16x128xf32>
    tpu.vector_store %arg16[%c0_81, %c0_82], %67 {strides = array<i32>} : memref<16x128xf32, #tpu.memory_space<vmem>>, vector<16x128xf32>,
    return
  }
}

</mosaic_0001>

<bundles_post_ra>
// kernel: crann_forward.4
= control target key start
LH: loop header
LB: loop body
LE: loop exit
PB: predicated region body
PF: predicated region fallthrough
CT: control target
= control target key end

     0   :  { %vm60_vm0 = vcmask 1043456   ;;  %vm61_vm1 = vcmask 1044480   ;;  %v298_v2 = vmov 65535   ;;  %v299_v5 = vmov 0   ;;  %s353_s0 = inlined_call_operand.vmem [shape: bf16[9,1024], index: 0, kind: input, shape index: {}]   ;;  %s354_s2 = inlined_call_operand.vmem [shape: f32[8,1], index: 2, kind: input, shape index: {}]   ;;  %s355_s1 = inlined_call_operand.vmem [shape: bf16[8,9], index: 1, kind: input, shape index: {}]   ;;  %s356_s3 = inlined_call_operand.vmem [shape: bf16[8,256], index: 3, kind: output, shape index: {}]  }
   0x1   :  { %v16_v0 = vld [vmem:[%s353_s0] sm:$0xff]  ;;  %v62_v3 = vsel %vm60_vm0, 4294967295, %v298_v2  ;;  %v17_v4 = vld [vmem:[%s353_s0 + $0x8] sm:$0xff]  ;;  %120 = vmatprep.mubr.bf16.mxu0 %v299_v5  ;;  %161 = vmatprep.mubr.bf16.mxu1 %v299_v5  ;;  %v18_v10 = vld [vmem:[%s353_s0 + $0x10] sm:$0xff]  ;;  %vm56_vm2 = vcmask 72704  }
   0x2   :  { %v20_v1 = vld [vmem:[%s353_s0 + $0x20] sm:$0x11]  ;;  %v63_v7 = vsel %vm61_vm1, %v62_v3, 0  ;;  %v21_v8 = vld [vmem:[%s353_s0 + $0x28] sm:$0x11]  ;;  %297 = vset.pattern.permute.xlu0 %v299_v5  ;;  %v19_v14 = vld [vmem:[%s353_s0 + $0x18] sm:$0xff] }
   0x3   :  { %v282_v6 = vcombine.high %v16_v0, %v20_v1  ;;  %v281_v9 = vcombine.low %v16_v0, %v20_v1  ;;  %v284_v11 = vcombine.high %v17_v4, %v21_v8  ;;  %v283_v12 = vcombine.low %v17_v4, %v21_v8  ;;  %v22_v13 = vld [vmem:[%s353_s0 + $0x30] sm:$0x11]  ;;  %v23_v15 = vld [vmem:[%s353_s0 + $0x38] sm:$0x11]  ;;  %v258_v20 = vld [vmem:[%s354_s2] sm:$0xff] }
   0x4   :  { %v285_v18 = vcombine.low %v18_v10, %v22_v13  ;;  %v286_v19 = vcombine.high %v18_v10, %v22_v13  ;;  %v287_v23 = vcombine.low %v19_v14, %v23_v15  ;;  %v288_v24 = vcombine.high %v19_v14, %v23_v15  ;;  %261 = vperm.xlu0 %297, %v258_v20   ;;  %v15_v26 = vld [vmem:[%s355_s1] sm:$0xf] }
   0x5   :  { %v68_v16 = vand.u32 %v282_v6, %v63_v7  ;;  %v65_v17 = vand.u32 %v281_v9, %v63_v7  ;;  %v74_v21 = vand.u32 %v284_v11, %v63_v7  ;;  %v71_v22 = vand.u32 %v283_v12, %v63_v7 }
   0x6   :  { %v80_v25 = vand.u32 %v286_v19, %v63_v7  ;;  %v77_v27 = vand.u32 %v285_v18, %v63_v7  ;;  %v86_v28 = vand.u32 %v288_v24, %v63_v7  ;;  %v83_v29 = vand.u32 %v287_v23, %v63_v7 }
   0x7   :  { %88 = vmatprep.subr.bf16.mxu0 %v68_v16  ;;  %129 = vmatprep.subr.bf16.mxu1 %v74_v21 }
   0x8   :  { %89 = vmatpush1.bf16.msra.mxu0 %v65_v17  ;;  %130 = vmatpush1.bf16.msra.mxu1 %v71_v22 }
   0x9   :  { %170 = vmatprep.subr.bf16.mxu0 %v80_v25  ;;  %211 = vmatprep.subr.bf16.mxu1 %v86_v28 }
   0xb   :  { %289 = vmatmul.mubr.msk.bf16.vlgmr.msra.gmra.mrb[0].mxu0 %vm56_vm2, %v15_v26  ;;  %290 = vmatmul.mubr.msk.bf16.vlgmr.msra.gmra.mrb[0].mxu1 %vm56_vm2, %v15_v26 }
   0xc   :  { %171 = vmatpush1.bf16.msra.mxu0 %v77_v27  ;;  %212 = vmatpush1.bf16.msra.mxu1 %v83_v29 }
   0xd   :  { %202 = vmatprep.mubr.bf16.mxu0 %v299_v5  ;;  %243 = vmatprep.mubr.bf16.mxu1 %v299_v5 }
  0x13   :  { %291 = vmatmul.mubr.msk.bf16.vlgmr.msra.gmra.mrb[4].mxu0 %vm56_vm2, %v15_v26  ;;  %292 = vmatmul.mubr.msk.bf16.vlgmr.msra.gmra.mrb[4].mxu1 %vm56_vm2, %v15_v26 }
  0x83   :  { %v262_v41 = vpop.permute.xlu0 %261 }
  0xde   :  { %v122_v30 = vpop.f32.mrb[0].mxu0  ;;  %v163_v31 = vpop.f32.mrb[0].mxu1 }
  0xdf   :  { %v124_v32 = vpop.f32.mrb[1].mxu0  ;;  %v252_v33 = vmax.f32 %v122_v30, %v163_v31  ;;  %v165_v34 = vpop.f32.mrb[1].mxu1 }
  0xe0   :  { %v126_v35 = vpop.f32.mrb[2].mxu0  ;;  %v253_v36 = vmax.f32 %v124_v32, %v165_v34  ;;  %v167_v37 = vpop.f32.mrb[2].mxu1 }
  0xe1   :  { %v127_v38 = vpop.f32.mrb[3].mxu0  ;;  %v168_v39 = vpop.f32.mrb[3].mxu1 }
  0xe6   :  { %v204_v40 = vpop.f32.mrb[4].mxu0  ;;  %v245_v43 = vpop.f32.mrb[4].mxu1 }
  0xe7   :  { %v254_v42 = vmax.f32 %v252_v33, %v204_v40  ;;  %v206_v44 = vpop.f32.mrb[5].mxu0  ;;  %v247_v46 = vpop.f32.mrb[5].mxu1 }
  0xe8   :  { %v255_v45 = vmax.f32 %v253_v36, %v206_v44  ;;  %v208_v47 = vpop.f32.mrb[6].mxu0  ;;  %v249_v49 = vpop.f32.mrb[6].mxu1 }
  0xe9   :  { %v256_v48 = vmax.f32 %v254_v42, %v245_v43  ;;  %v209_v50 = vpop.f32.mrb[7].mxu0  ;;  %v250_v52 = vpop.f32.mrb[7].mxu1 }
  0xea   :  { %v257_v51 = vmax.f32 %v255_v45, %v247_v46 }
  0xeb   :  { %v264_v53 = vadd.f32 %v262_v41, %v256_v48 }
  0xec   :  { %v265_v54 = vadd.f32 %v262_v41, %v257_v51 }
  0xed   :  { %v266_v55 = vmax.f32 %v264_v53, 0.0 }
  0xee   :  { %v267_v56 = vmax.f32 %v265_v54, 0.0 }
  0xf0   :  { %v294_v57 = vpack.c.bf16 %v267_v56, %v266_v55 }
  0xf2   :  { %276 = vst [vmem:[%s356_s3] sm:$0xff] %v294_v57 }

// kernel: crann_forward.5
= control target key start
LH: loop header
LB: loop body
LE: loop exit
PB: predicated region body
PF: predicated region fallthrough
CT: control target
= control target key end

     0   :  { %v334_v1 = vmov 0   ;;  %vm134_vm0 = vcmask 1043456   ;;  %vm130_vm1 = vcmask 588800   ;;  %s421_s0 = inlined_call_operand.vmem [shape: bf16[72,512], index: 0, kind: input, shape index: {}]   ;;  %s422_s2 = inlined_call_operand.vmem [shape: f32[16,1], index: 2, kind: input, shape index: {}]   ;;  %s423_s1 = inlined_call_operand.vmem [shape: bf16[16,72], index: 1, kind: input, shape index: {}]   ;;  %s424_s3 = inlined_call_operand.vmem [shape: bf16[16,128], index: 3, kind: output, shape index: {}]  }
   0x1   :  { %v305_v0 = vld [vmem:[%s421_s0 + $0x4] ss:$16 sps:$4 sm:$0xff]   ;;  %179 = vmatprep.mubr.bf16.mxu0 %v334_v1  ;;  %222 = vmatprep.mubr.bf16.mxu1 %v334_v1  ;;  %v307_v2 = vld [vmem:[%s421_s0 + $0xc] ss:$16 sps:$4 sm:$0xff]   ;;  %v309_v3 = vld [vmem:[%s421_s0] ss:$16 sps:$4 sm:$0xff]  }
   0x2   :  { %304 = vset.pattern.permute.xlu0 %v334_v1  ;;  %147 = vmatprep.subr.bf16.mxu0 %v305_v0  ;;  %v310_v4 = vld [vmem:[%s421_s0 + $0x8] ss:$16 sps:$4 sm:$0xff]   ;;  %v311_v5 = vld [vmem:[%s421_s0 + $0x24] ss:$16 sps:$4 sm:$0xff]   ;;  %v313_v6 = vld [vmem:[%s421_s0 + $0x2c] ss:$16 sps:$4 sm:$0xff]  }
   0x3   :  { %190 = vmatprep.subr.bf16.mxu1 %v307_v2  ;;  %148 = vmatpush1.bf16.msra.mxu0 %v309_v3  ;;  %v315_v7 = vld [vmem:[%s421_s0 + $0x20] ss:$16 sps:$4 sm:$0xff]   ;;  %v316_v8 = vld [vmem:[%s421_s0 + $0x28] ss:$16 sps:$4 sm:$0xff]   ;;  %v317_v9 = vld [vmem:[%s421_s0 + $0x44] ss:$16 sps:$4 sm:$0xff]  }
   0x4   :  { %191 = vmatpush1.bf16.msra.mxu1 %v310_v4  ;;  %149 = vmatprep.subr.bf16.mxu0 %v311_v5  ;;  %v319_v10 = vld [vmem:[%s421_s0 + $0x4c] ss:$16 sps:$4 sm:$0xff]   ;;  %v321_v11 = vld [vmem:[%s421_s0 + $0x40] ss:$16 sps:$4 sm:$0xff]   ;;  %v322_v12 = vld [vmem:[%s421_s0 + $0x48] ss:$16 sps:$4 sm:$0xff]  }
   0x5   :  { %192 = vmatprep.subr.bf16.mxu1 %v313_v6  ;;  %v323_v13 = vld [vmem:[%s421_s0 + $0x64] ss:$16 sps:$4 sm:$0xff]   ;;  %v325_v14 = vld [vmem:[%s421_s0 + $0x6c] ss:$16 sps:$4 sm:$0xff]   ;;  %v327_v17 = vld [vmem:[%s421_s0 + $0x60] ss:$16 sps:$4 sm:$0xff]  }
   0x6   :  { %v33_v15 = vld [vmem:[%s421_s0 + $0x80] sm:$0xff]  ;;  %v34_v16 = vld [vmem:[%s421_s0 + $0x88] sm:$0xff] }
   0x7   :  { %150 = vmatpush1.bf16.msra.mxu0 %v315_v7  ;;  %v328_v18 = vld [vmem:[%s421_s0 + $0x68] ss:$16 sps:$4 sm:$0xff]   ;;  %v287_v19 = vcombine.high %v33_v15, %v33_v15  ;;  %v239_v20 = vld [vmem:[%s422_s2] sm:$0xff]  ;;  %v289_v21 = vcombine.high %v34_v16, %v34_v16  ;;  %v286_v22 = vcombine.low %v33_v15, %v33_v15  ;;  %v288_v23 = vcombine.low %v34_v16, %v34_v16 }
   0x8   :  { %193 = vmatpush1.bf16.msra.mxu1 %v316_v8  ;;  %151 = vmatprep.subr.bf16.mxu0 %v317_v9  ;;  %v240_v24 = vld [vmem:[%s422_s2 + $0x8] sm:$0xff]  ;;  %v333_v27 = vld [vmem:[%s423_s1] sm:$0xff]  }
   0x9   :  { %194 = vmatprep.subr.bf16.mxu1 %v319_v10  ;;  %243 = vperm.xlu0 %304, %v239_v20   ;;  %v136_v25 = vsel %vm134_vm0, %v286_v22, 0  ;;  %v142_v26 = vsel %vm134_vm0, %v288_v23, 0 }
   0xb   :  { %152 = vmatpush1.bf16.msra.mxu0 %v321_v11 }
   0xc   :  { %195 = vmatpush1.bf16.msra.mxu1 %v322_v12  ;;  %153 = vmatprep.subr.bf16.mxu0 %v323_v13 }
   0xd   :  { %196 = vmatprep.subr.bf16.mxu1 %v325_v14  ;;  %248 = vperm.xlu0 %304, %v240_v24  }
   0xf   :  { %154 = vmatpush1.bf16.msra.mxu0 %v327_v17 }
  0x10   :  { %197 = vmatpush1.bf16.msra.mxu1 %v328_v18  ;;  %290 = vmatprep.subr.msk.bf16.mxu0 %vm134_vm0, %v287_v19 }
  0x11   :  { %292 = vmatprep.subr.msk.bf16.mxu1 %vm134_vm0, %v289_v21 }
  0x13   :  { %156 = vmatpush1.bf16.msra.mxu0 %v136_v25 }
  0x14   :  { %199 = vmatpush1.bf16.msra.mxu1 %v142_v26 }
  0x16   :  { %291 = vmatmul.mubr.msk.bf16.vlgmr.msra.gmra.mrb[0].mxu0 %vm130_vm1, %v333_v27 }
  0x17   :  { %293 = vmatmul.mubr.msk.bf16.vlgmr.msra.gmra.mrb[0].mxu1 %vm130_vm1, %v333_v27 }
  0x88   :  { %v244_v28 = vpop.permute.xlu0 %243 }
  0x8c   :  { %v249_v44 = vpop.permute.xlu0 %248 }
  0xe9   :  { %v181_v29 = vpop.f32.mrb[0].mxu0 }
  0xea   :  { %v224_v30 = vpop.f32.mrb[0].mxu1  ;;  %v183_v31 = vpop.f32.mrb[1].mxu0 }
  0xeb   :  { %v226_v32 = vpop.f32.mrb[1].mxu1  ;;  %v233_v33 = vmax.f32 %v181_v29, %v183_v31  ;;  %v185_v34 = vpop.f32.mrb[2].mxu0 }
  0xec   :  { %v228_v35 = vpop.f32.mrb[2].mxu1  ;;  %v187_v36 = vpop.f32.mrb[3].mxu0 }
  0xed   :  { %v230_v37 = vpop.f32.mrb[3].mxu1  ;;  %v235_v38 = vmax.f32 %v233_v33, %v224_v30  ;;  %v234_v39 = vmax.f32 %v185_v34, %v187_v36 }
  0xef   :  { %v237_v40 = vmax.f32 %v235_v38, %v226_v32  ;;  %v236_v41 = vmax.f32 %v234_v39, %v228_v35 }
  0xf1   :  { %v251_v42 = vadd.f32 %v244_v28, %v237_v40  ;;  %v238_v43 = vmax.f32 %v236_v41, %v230_v37 }
  0xf3   :  { %v252_v45 = vadd.f32 %v249_v44, %v238_v43  ;;  %v253_v46 = vmax.f32 %v251_v42, 0.0 }
  0xf5   :  { %v254_v47 = vmax.f32 %v252_v45, 0.0 }
  0xf7   :  { %v301_v48 = vpack.c.bf16 %v254_v47, %v253_v46 }
  0xf9   :  { %302 = vst [vmem:[%s424_s3] sm:$0xff] %v301_v48  }

// kernel: crann_forward.6
= control target key start
LH: loop header
LB: loop body
LE: loop exit
PB: predicated region body
PF: predicated region fallthrough
CT: control target
= control target key end

     0   :  { %v560_v1 = vmov 0   ;;  %vm253_vm0 = vcmask 130048   ;;  %s723_s0 = inlined_call_operand.vmem [shape: bf16[144,512], index: 0, kind: input, shape index: {}]   ;;  %s724_s1 = inlined_call_operand.vmem [shape: bf16[32,144], index: 1, kind: input, shape index: {}]   ;;  %s725_s2 = inlined_call_operand.vmem [shape: f32[32,1], index: 2, kind: input, shape index: {}]   ;;  %s726_s3 = inlined_call_operand.vmem [shape: bf16[32,128], index: 3, kind: output, shape index: {}]  }
   0x1   :  { %v500_v0 = vld [vmem:[%s723_s0 + $0x4] ss:$16 sps:$4 sm:$0xff]   ;;  %498 = vset.pattern.permute.xlu0 %v560_v1  ;;  %499 = vset.pattern.permute.xlu1 %v560_v1  ;;  %v502_v2 = vld [vmem:[%s723_s0 + $0xc] ss:$16 sps:$4 sm:$0xff]   ;;  %v504_v3 = vld [vmem:[%s723_s0] ss:$16 sps:$4 sm:$0xff]  }
   0x2   :  { %260 = vmatprep.subr.bf16.mxu0 %v500_v0  ;;  %v505_v4 = vld [vmem:[%s723_s0 + $0x8] ss:$16 sps:$4 sm:$0xff]   ;;  %313 = vmatprep.subr.bf16.mxu1 %v502_v2  ;;  %v506_v5 = vld [vmem:[%s723_s0 + $0x24] ss:$16 sps:$4 sm:$0xff]   ;;  %v508_v6 = vld [vmem:[%s723_s0 + $0x2c] ss:$16 sps:$4 sm:$0xff]  }
   0x3   :  { %261 = vmatpush1.bf16.msra.mxu0 %v504_v3  ;;  %314 = vmatpush1.bf16.msra.mxu1 %v505_v4  ;;  %v510_v7 = vld [vmem:[%s723_s0 + $0x20] ss:$16 sps:$4 sm:$0xff]   ;;  %v511_v8 = vld [vmem:[%s723_s0 + $0x28] ss:$16 sps:$4 sm:$0xff]   ;;  %v512_v9 = vld [vmem:[%s723_s0 + $0x44] ss:$16 sps:$4 sm:$0xff]  }
   0x4   :  { %262 = vmatprep.subr.bf16.mxu0 %v506_v5  ;;  %315 = vmatprep.subr.bf16.mxu1 %v508_v6  ;;  %v514_v10 = vld [vmem:[%s723_s0 + $0x4c] ss:$16 sps:$4 sm:$0xff]   ;;  %v516_v11 = vld [vmem:[%s723_s0 + $0x40] ss:$16 sps:$4 sm:$0xff]   ;;  %v517_v12 = vld [vmem:[%s723_s0 + $0x48] ss:$16 sps:$4 sm:$0xff]  }
   0x5   :  { %v518_v13 = vld [vmem:[%s723_s0 + $0x64] ss:$16 sps:$4 sm:$0xff]   ;;  %v520_v14 = vld [vmem:[%s723_s0 + $0x6c] ss:$16 sps:$4 sm:$0xff]   ;;  %v522_v15 = vld [vmem:[%s723_s0 + $0x60] ss:$16 sps:$4 sm:$0xff]  }
   0x6   :  { %v523_v16 = vld [vmem:[%s723_s0 + $0x68] ss:$16 sps:$4 sm:$0xff]   ;;  %v524_v17 = vld [vmem:[%s723_s0 + $0x84] ss:$16 sps:$4 sm:$0xff]   ;;  %v526_v18 = vld [vmem:[%s723_s0 + $0x8c] ss:$16 sps:$4 sm:$0xff]  }
   0x7   :  { %263 = vmatpush1.bf16.msra.mxu0 %v510_v7  ;;  %316 = vmatpush1.bf16.msra.mxu1 %v511_v8  ;;  %v528_v19 = vld [vmem:[%s723_s0 + $0x80] ss:$16 sps:$4 sm:$0xff]   ;;  %v529_v20 = vld [vmem:[%s723_s0 + $0x88] ss:$16 sps:$4 sm:$0xff]   ;;  %v530_v21 = vld [vmem:[%s723_s0 + $0xa4] ss:$16 sps:$4 sm:$0xff]  }
   0x8   :  { %264 = vmatprep.subr.bf16.mxu0 %v512_v9  ;;  %317 = vmatprep.subr.bf16.mxu1 %v514_v10  ;;  %v532_v22 = vld [vmem:[%s723_s0 + $0xac] ss:$16 sps:$4 sm:$0xff]   ;;  %v534_v23 = vld [vmem:[%s723_s0 + $0xa0] ss:$16 sps:$4 sm:$0xff]   ;;  %v535_v24 = vld [vmem:[%s723_s0 + $0xa8] ss:$16 sps:$4 sm:$0xff]  }
   0x9   :  { %v536_v25 = vld [vmem:[%s723_s0 + $0xc4] ss:$16 sps:$4 sm:$0xff]   ;;  %v538_v26 = vld [vmem:[%s723_s0 + $0xcc] ss:$16 sps:$4 sm:$0xff]   ;;  %v540_v27 = vld [vmem:[%s723_s0 + $0xc0] ss:$16 sps:$4 sm:$0xff]  }
   0xa   :  { %v541_v28 = vld [vmem:[%s723_s0 + $0xc8] ss:$16 sps:$4 sm:$0xff]   ;;  %v542_v29 = vld [vmem:[%s723_s0 + $0xe4] ss:$16 sps:$4 sm:$0xff]   ;;  %v544_v30 = vld [vmem:[%s723_s0 + $0xec] ss:$16 sps:$4 sm:$0xff]  }
   0xb   :  { %265 = vmatpush1.bf16.msra.mxu0 %v516_v11  ;;  %318 = vmatpush1.bf16.msra.mxu1 %v517_v12  ;;  %v556_v31 = vld [vmem:[%s724_s1 + $0x4] ss:$8 sps:$4 sm:$0xff]   ;;  %v380_v33 = vld [vmem:[%s725_s2 + $0x10] sm:$0xff]  ;;  %v547_v35 = vld [vmem:[%s723_s0 + $0xe8] ss:$16 sps:$4 sm:$0xff]  }
   0xc   :  { %266 = vmatprep.subr.bf16.mxu0 %v518_v13  ;;  %319 = vmatprep.subr.bf16.mxu1 %v520_v14  ;;  %v378_v32 = vld [vmem:[%s725_s2] sm:$0xff]  ;;  %v550_v37 = vld [vmem:[%s723_s0 + $0x10c] ss:$16 sps:$4 sm:$0xff]   ;;  %v553_v41 = vld [vmem:[%s723_s0 + $0x108] ss:$16 sps:$4 sm:$0xff]  }
   0xd   :  { %474 = vmatprep.mubr.msk.bf16.mxu0 %vm253_vm0, %v556_v31  ;;  %476 = vmatprep.mubr.msk.bf16.mxu1 %vm253_vm0, %v556_v31  ;;  %v546_v34 = vld [vmem:[%s723_s0 + $0xe0] ss:$16 sps:$4 sm:$0xff]   ;;  %v548_v36 = vld [vmem:[%s723_s0 + $0x104] ss:$16 sps:$4 sm:$0xff]   ;;  %v379_v38 = vld [vmem:[%s725_s2 + $0x8] sm:$0xff] }
   0xe   :  { %384 = vperm.xlu0 %498, %v378_v32   ;;  %394 = vperm.xlu1 %499, %v380_v33   ;;  %v381_v39 = vld [vmem:[%s725_s2 + $0x18] sm:$0xff]  ;;  %v552_v40 = vld [vmem:[%s723_s0 + $0x100] ss:$16 sps:$4 sm:$0xff]  }
   0xf   :  { %267 = vmatpush1.bf16.msra.mxu0 %v522_v15  ;;  %320 = vmatpush1.bf16.msra.mxu1 %v523_v16  ;;  %v554_v42 = vld [vmem:[%s724_s1] ss:$8 sps:$4 sm:$0xff]   ;;  %v557_v43 = vld [vmem:[%s724_s1 + $0x14] ss:$8 sps:$4 sm:$0xff]   ;;  %v559_v44 = vld [vmem:[%s724_s1 + $0x10] ss:$8 sps:$4 sm:$0xff]  }
  0x10   :  { %268 = vmatprep.subr.bf16.mxu0 %v524_v17  ;;  %321 = vmatprep.subr.bf16.mxu1 %v526_v18 }
  0x12   :  { %389 = vperm.xlu0 %498, %v379_v38   ;;  %399 = vperm.xlu1 %499, %v381_v39  }
  0x13   :  { %269 = vmatpush1.bf16.msra.mxu0 %v528_v19  ;;  %322 = vmatpush1.bf16.msra.mxu1 %v529_v20 }
  0x14   :  { %270 = vmatprep.subr.bf16.mxu0 %v530_v21  ;;  %323 = vmatprep.subr.bf16.mxu1 %v532_v22 }
  0x17   :  { %271 = vmatpush1.bf16.msra.mxu0 %v534_v23  ;;  %324 = vmatpush1.bf16.msra.mxu1 %v535_v24 }
  0x18   :  { %272 = vmatprep.subr.bf16.mxu0 %v536_v25  ;;  %325 = vmatprep.subr.bf16.mxu1 %v538_v26 }
  0x1b   :  { %273 = vmatpush1.bf16.msra.mxu0 %v540_v27  ;;  %326 = vmatpush1.bf16.msra.mxu1 %v541_v28 }
  0x1c   :  { %274 = vmatprep.subr.bf16.mxu0 %v542_v29  ;;  %327 = vmatprep.subr.bf16.mxu1 %v544_v30 }
  0x1f   :  { %275 = vmatpush1.bf16.msra.mxu0 %v546_v34  ;;  %328 = vmatpush1.bf16.msra.mxu1 %v547_v35 }
  0x20   :  { %276 = vmatprep.subr.bf16.mxu0 %v548_v36  ;;  %329 = vmatprep.subr.bf16.mxu1 %v550_v37 }
  0x23   :  { %277 = vmatpush1.bf16.msra.mxu0 %v552_v40  ;;  %330 = vmatpush1.bf16.msra.mxu1 %v553_v41 }
  0x26   :  { %293 = vmatmul.mubr.bf16.vlgmr.msra.gmra.mrb[0].mxu0 %v554_v42  ;;  %346 = vmatmul.mubr.bf16.vlgmr.msra.gmra.mrb[0].mxu1 %v554_v42 }
  0x27   :  { %475 = vmatprep.mubr.msk.bf16.mxu0 %vm253_vm0, %v557_v43  ;;  %477 = vmatprep.mubr.msk.bf16.mxu1 %vm253_vm0, %v557_v43 }
  0x2e   :  { %303 = vmatmul.mubr.bf16.gmra.mrb[4].mxu0 %v559_v44  ;;  %356 = vmatmul.mubr.bf16.gmra.mrb[4].mxu1 %v559_v44 }
  0x8d   :  { %v385_v45 = vpop.permute.xlu0 %384  ;;  %v395_v59 = vpop.permute.xlu1 %394 }
  0x91   :  { %v390_v60 = vpop.permute.xlu0 %389  ;;  %v400_v18 = vpop.permute.xlu1 %399 }
  0xf9   :  { %v294_v46 = vpop.f32.mrb[0].mxu0  ;;  %v347_v47 = vpop.f32.mrb[0].mxu1 }
  0xfa   :  { %v296_v48 = vpop.f32.mrb[1].mxu0  ;;  %v349_v49 = vpop.f32.mrb[1].mxu1 }
  0xfb   :  { %v366_v50 = vmax.f32 %v294_v46, %v296_v48  ;;  %v298_v51 = vpop.f32.mrb[2].mxu0  ;;  %v351_v52 = vpop.f32.mrb[2].mxu1 }
  0xfc   :  { %v300_v53 = vpop.f32.mrb[3].mxu0  ;;  %v353_v54 = vpop.f32.mrb[3].mxu1 }
  0xfd   :  { %v370_v55 = vmax.f32 %v366_v50, %v347_v47  ;;  %v367_v56 = vmax.f32 %v298_v51, %v300_v53 }
  0xff   :  { %v374_v57 = vmax.f32 %v370_v55, %v349_v49  ;;  %v371_v58 = vmax.f32 %v367_v56, %v351_v52 }
 0x101   :  { %v375_v61 = vmax.f32 %v371_v58, %v353_v54  ;;  %v402_v62 = vadd.f32 %v385_v45, %v374_v57  ;;  %v304_v63 = vpop.f32.mrb[4].mxu0  ;;  %v357_v0 = vpop.f32.mrb[4].mxu1 }
 0x102   :  { %v306_v1 = vpop.f32.mrb[5].mxu0  ;;  %v359_v2 = vpop.f32.mrb[5].mxu1 }
 0x103   :  { %v403_v3 = vadd.f32 %v390_v60, %v375_v61  ;;  %v368_v4 = vmax.f32 %v304_v63, %v306_v1  ;;  %v308_v5 = vpop.f32.mrb[6].mxu0  ;;  %v361_v6 = vpop.f32.mrb[6].mxu1  ;;  %v406_v9 = vmax.f32 %v402_v62, 0.0 }
 0x104   :  { %v310_v7 = vpop.f32.mrb[7].mxu0  ;;  %v363_v8 = vpop.f32.mrb[7].mxu1 }
 0x105   :  { %v407_v10 = vmax.f32 %v403_v3, 0.0  ;;  %v372_v11 = vmax.f32 %v368_v4, %v357_v0  ;;  %v369_v12 = vmax.f32 %v308_v5, %v310_v7 }
 0x107   :  { %v489_v13 = vpack.c.bf16 %v407_v10, %v406_v9  ;;  %v376_v14 = vmax.f32 %v372_v11, %v359_v2  ;;  %v373_v15 = vmax.f32 %v369_v12, %v361_v6 }
 0x109   :  { %490 = vst [vmem:[%s726_s3] sm:$0xff] %v489_v13   ;;  %v404_v16 = vadd.f32 %v395_v59, %v376_v14  ;;  %v377_v17 = vmax.f32 %v373_v15, %v363_v8 }
 0x10b   :  { %v405_v19 = vadd.f32 %v400_v18, %v377_v17  ;;  %v408_v20 = vmax.f32 %v404_v16, 0.0 }
 0x10d   :  { %v409_v21 = vmax.f32 %v405_v19, 0.0 }
 0x10f   :  { %v494_v22 = vpack.c.bf16 %v409_v21, %v408_v20 }
 0x111   :  { %496 = vst [vmem:[%s726_s3 + $0x8] sm:$0xff] %v494_v22  }

// kernel: crann_forward.7
= control target key start
LH: loop header
LB: loop body
LE: loop exit
PB: predicated region body
PF: predicated region fallthrough
CT: control target
= control target key end

     0   :  { %s3871_s0 = inlined_call_operand.vmem [shape: bf16[16,32], index: 0, kind: input, shape index: {}]   ;;  %s3872_s1 = inlined_call_operand.vmem [shape: bf16[16,32], index: 1, kind: input, shape index: {}]   ;;  %s3873_s2 = inlined_call_operand.vmem [shape: bf16[32,512], index: 2, kind: input, shape index: {}]   ;;  %s3874_s3 = inlined_call_operand.vmem [shape: bf16[32,512], index: 3, kind: input, shape index: {}]   ;;  %s3875_s4 = inlined_call_operand.vmem [shape: bf16[128,512], index: 4, kind: input, shape index: {}]   ;;  %s3876_s5 = inlined_call_operand.vmem [shape: f32[1,512], index: 5, kind: input, shape index: {}]   ;;  %s3877_s6 = inlined_call_operand.vmem [shape: bf16[128,32], index: 6, kind: input, shape index: {}]   ;;  %s3878_s7 = inlined_call_operand.vmem [shape: bf16[128,32], index: 7, kind: input, shape index: {}]   ;;  %s3879_s8 = inlined_call_operand.vmem [shape: f32[1,32], index: 8, kind: input, shape index: {}]   ;;  %s3880_s9 = inlined_call_operand.vmem [shape: bf16[32,512], index: 9, kind: input, shape index: {}]   ;;  %s3881_s10 = inlined_call_operand.vmem [shape: bf16[32,512], index: 10, kind: input, shape index: {}]   ;;  %s3882_s11 = inlined_call_operand.vmem [shape: bf16[128,512], index: 11, kind: input, shape index: {}]   ;;  %s3883_s12 = inlined_call_operand.vmem [shape: f32[1,512], index: 12, kind: input, shape index: {}]   ;;  %s3884_s13 = inlined_call_operand.vmem [shape: bf16[128,128], index: 13, kind: input, shape index: {}]   ;;  %s3885_s14 = inlined_call_operand.vmem [shape: bf16[128,128], index: 14, kind: input, shape index: {}]   ;;  %s3886_s15 = inlined_call_operand.vmem [shape: f32[1,128], index: 15, kind: input, shape index: {}]   ;;  %s3887_s16 = inlined_call_operand.hbm [shape: f32[16,128], index: 16, kind: output, shape index: {}]  }
   0x1   :  { %3890 = sst [smem:[#allocation10_spill]] %s3871_s0 }
   0x2   :  { %21 = vsyncpa [#allocation8], 0  ;;  %v2738_v0 = vld [vmem:[%s3874_s3 + $0x4] ss:$16 sps:$4 sm:$0xff]   ;;  %v2876_v1 = vmov 0   ;;  %vm120_vm0 = vcmask 261120   ;;  %v346_v52 = vlaneseq }
   0x3   :  { %156 = vmatprep.mubr.bf16.mxu0 %v2876_v1  ;;  %199 = vmatprep.mubr.bf16.mxu1 %v2876_v1  ;;  %v2740_v2 = vld [vmem:[%s3874_s3 + $0xc] ss:$16 sps:$4 sm:$0xff]   ;;  %v2742_v3 = vld [vmem:[%s3874_s3] ss:$16 sps:$4 sm:$0xff]   ;;  %v2743_v4 = vld [vmem:[%s3874_s3 + $0x8] ss:$16 sps:$4 sm:$0xff]  }
   0x4   :  { %124 = vmatprep.subr.bf16.mxu0 %v2738_v0  ;;  %v2744_v5 = vld [vmem:[%s3874_s3 + $0x24] ss:$16 sps:$4 sm:$0xff]   ;;  %167 = vmatprep.subr.bf16.mxu1 %v2740_v2  ;;  %v2746_v6 = vld [vmem:[%s3874_s3 + $0x2c] ss:$16 sps:$4 sm:$0xff]   ;;  %v2748_v7 = vld [vmem:[%s3874_s3 + $0x20] ss:$16 sps:$4 sm:$0xff]  }
   0x5   :  { %125 = vmatpush1.bf16.msra.mxu0 %v2742_v3  ;;  %168 = vmatpush1.bf16.msra.mxu1 %v2743_v4  ;;  %v2749_v8 = vld [vmem:[%s3874_s3 + $0x28] ss:$16 sps:$4 sm:$0xff]   ;;  %v2750_v9 = vld [vmem:[%s3872_s1] sm:$0xff]   ;;  %v2756_v13 = vld [vmem:[%s3873_s2 + $0xc] ss:$16 sps:$4 sm:$0xff]   ;;  %s3891_s25 = sld [smem:[#allocation10_spill]] }
   0x6   :  { %126 = vmatprep.subr.bf16.mxu0 %v2744_v5  ;;  %169 = vmatprep.subr.bf16.mxu1 %v2746_v6  ;;  %v2751_v10 = vld [vmem:[%s3873_s2] ss:$16 sps:$4 sm:$0xff]   ;;  %v2753_v11 = vld [vmem:[%s3873_s2 + $0x4] ss:$16 sps:$4 sm:$0xff]   ;;  %v2754_v12 = vld [vmem:[%s3873_s2 + $0x8] ss:$16 sps:$4 sm:$0xff]  }
   0x7   :  { %v2759_v14 = vld [vmem:[%s3873_s2 + $0x24] ss:$16 sps:$4 sm:$0xff]   ;;  %v2762_v15 = vld [vmem:[%s3873_s2 + $0x2c] ss:$16 sps:$4 sm:$0xff]   ;;  %v2757_v16 = vld [vmem:[%s3873_s2 + $0x20] ss:$16 sps:$4 sm:$0xff]  }
   0x8   :  { %v2760_v17 = vld [vmem:[%s3873_s2 + $0x28] ss:$16 sps:$4 sm:$0xff]   ;;  %v2877_v19 = vmov 0.0   ;;  %v3038_v20 = vld [vmem:[%s3875_s4] sm:$0xff]  ;;  %v3048_v22 = vld [vmem:[%s3875_s4 + $0x10] sm:$0xff]  ;;  %v3195_v53 = vshrl.u32 %v346_v52, 7 }
   0x9   :  { %127 = vmatpush1.bf16.msra.mxu0 %v2748_v7  ;;  %170 = vmatpush1.bf16.msra.mxu1 %v2749_v8  ;;  %470 = vst [vmem:[#allocation5] sm:$0x3] %v2877_v19  ;;  %471 = vst [vmem:[#allocation6] sm:$0x3] %v2877_v19  ;;  %v3043_v21 = vld [vmem:[%s3875_s4 + $0x8] sm:$0xff]  ;;  %v3053_v23 = vld [vmem:[%s3875_s4 + $0x18] sm:$0xff] }
   0xa   :  { %258 = vmatprep.subr.bf16.mxu0 %v2753_v11  ;;  %301 = vmatprep.subr.bf16.mxu1 %v2756_v13  ;;  %v3058_v24 = vld [vmem:[%s3875_s4 + $0x20] sm:$0xff]  ;;  %v3063_v25 = vld [vmem:[%s3875_s4 + $0x28] sm:$0xff]  ;;  %v3068_v26 = vld [vmem:[%s3875_s4 + $0x30] sm:$0xff]  ;;  %v348_v54 = vsub.s32 0, %v3195_v53  ;;  %v2878_v56 = vmov 1983009808  }
   0xb   :  { %v2763_v18 = vld [vmem:[%s3891_s25] sm:$0xff]   ;;  %v3073_v27 = vld [vmem:[%s3875_s4 + $0x38] sm:$0xff]  ;;  %v3083_v29 = vld [vmem:[%s3875_s4 + $0x48] sm:$0xff]  ;;  %v387_v57 = vunpack.c.l.s4 %v2878_v56  ;;  %v356_v58 = vsub.s32 2, %v3195_v53  ;;  %v3889_v59 = vsub.s32 1, %v3195_v53  ;;  %v3888_v60 = vsub.s32 3, %v3195_v53 }
   0xc   :  { %2383 = vmatmul.mubr.msk.bf16.vlgmr.msra.gmra.mrb[0].mxu0 %vm120_vm0, %v2750_v9  ;;  %2384 = vmatmul.mubr.msk.bf16.vlgmr.msra.gmra.mrb[0].mxu1 %vm120_vm0, %v2750_v9  ;;  %v3078_v28 = vld [vmem:[%s3875_s4 + $0x40] sm:$0xff]  ;;  %v3088_v30 = vld [vmem:[%s3875_s4 + $0x50] sm:$0xff]  ;;  %v3093_v31 = vld [vmem:[%s3875_s4 + $0x58] sm:$0xff] }
   0xd   :  { %259 = vmatpush1.bf16.msra.mxu0 %v2751_v10  ;;  %302 = vmatpush1.bf16.msra.mxu1 %v2754_v12  ;;  %v3098_v32 = vld [vmem:[%s3875_s4 + $0x60] sm:$0xff]  ;;  %v3103_v33 = vld [vmem:[%s3875_s4 + $0x68] sm:$0xff]  ;;  %v3108_v34 = vld [vmem:[%s3875_s4 + $0x70] sm:$0xff]  ;;  %v388_v62 = vunpack.c.0.s8 %v387_v57 }
   0xe   :  { %260 = vmatprep.subr.bf16.mxu0 %v2759_v14  ;;  %303 = vmatprep.subr.bf16.mxu1 %v2762_v15  ;;  %v3113_v35 = vld [vmem:[%s3875_s4 + $0x78] sm:$0xff]  ;;  %v3118_v36 = vld [vmem:[%s3875_s4 + $0x80] sm:$0xff]  ;;  %v3123_v37 = vld [vmem:[%s3875_s4 + $0x88] sm:$0xff] }
   0xf   :  { %290 = vmatprep.mubr.bf16.mxu0 %v2876_v1  ;;  %333 = vmatprep.mubr.bf16.mxu1 %v2876_v1  ;;  %v3128_v38 = vld [vmem:[%s3875_s4 + $0x90] sm:$0xff]  ;;  %v3133_v39 = vld [vmem:[%s3875_s4 + $0x98] sm:$0xff]  ;;  %v3138_v40 = vld [vmem:[%s3875_s4 + $0xa0] sm:$0xff]  ;;  %v3213_v7 = vsub.s32 %v388_v62, %v3195_v53 }
  0x10   :  { %v3143_v41 = vld [vmem:[%s3875_s4 + $0xa8] sm:$0xff]  ;;  %v3148_v42 = vld [vmem:[%s3875_s4 + $0xb0] sm:$0xff]  ;;  %v3153_v43 = vld [vmem:[%s3875_s4 + $0xb8] sm:$0xff] }
  0x11   :  { %261 = vmatpush1.bf16.msra.mxu0 %v2757_v16  ;;  %304 = vmatpush1.bf16.msra.mxu1 %v2760_v17  ;;  %v3158_v44 = vld [vmem:[%s3875_s4 + $0xc0] sm:$0xff]  ;;  %v3163_v45 = vld [vmem:[%s3875_s4 + $0xc8] sm:$0xff]  ;;  %v3168_v46 = vld [vmem:[%s3875_s4 + $0xd0] sm:$0xff] }
  0x12   :  { %v3173_v47 = vld [vmem:[%s3875_s4 + $0xd8] sm:$0xff]  ;;  %v3178_v48 = vld [vmem:[%s3875_s4 + $0xe0] sm:$0xff]  ;;  %v3183_v49 = vld [vmem:[%s3875_s4 + $0xe8] sm:$0xff] }
  0x13   :  { %v3188_v50 = vld [vmem:[%s3875_s4 + $0xf0] sm:$0xff]  ;;  %v3193_v51 = vld [vmem:[%s3875_s4 + $0xf8] sm:$0xff]  ;;  %v344_v55 = vld [vmem:[%s3876_s5] sm:$0xf]  ;;  %s3223_s4 = smov 0  }
  0x14   :  { %v349_v61 = vrot.slane %v344_v55, %v348_v54  ;;  %v357_v63 = vrot.slane %v344_v55, %v356_v58  ;;  %v353_v0 = vrot.slane %v344_v55, %v3889_v59  ;;  %v361_v2 = vrot.slane %v344_v55, %v3888_v60 }
  0x18   :  { %2394 = vmatmul.mubr.msk.bf16.vlgmr.msra.gmra.mrb[0].mxu0 %vm120_vm0, %v2763_v18  ;;  %2395 = vmatmul.mubr.msk.bf16.vlgmr.msra.gmra.mrb[0].mxu1 %vm120_vm0, %v2763_v18 }
  0xeb   :  { %v292_v3 = vpop.f32.mrb[0].mxu0  ;;  %v335_v5 = vpop.f32.mrb[0].mxu1 }
  0xec   :  { %v366_v4 = vadd.f32 %v349_v61, %v292_v3  ;;  %v294_v6 = vpop.f32.mrb[1].mxu0  ;;  %v368_v8 = vadd.f32 %v357_v63, %v335_v5  ;;  %v337_v10 = vpop.f32.mrb[1].mxu1 }
  0xed   :  { %v367_v9 = vadd.f32 %v353_v0, %v294_v6  ;;  %v296_v11 = vpop.f32.mrb[2].mxu0  ;;  %v369_v12 = vadd.f32 %v361_v2, %v337_v10  ;;  %v339_v14 = vpop.f32.mrb[2].mxu1 }
  0xee   :  { %v370_v13 = vadd.f32 %v349_v61, %v296_v11  ;;  %v298_v15 = vpop.f32.mrb[3].mxu0  ;;  %v372_v18 = vadd.f32 %v357_v63, %v339_v14  ;;  %v341_v55 = vpop.f32.mrb[3].mxu1 }
  0xef   :  { %v382_v16 = vcombine.low %v366_v4, %v367_v9  ;;  %v383_v17 = vcombine.high %v366_v4, %v367_v9  ;;  %v371_v52 = vadd.f32 %v353_v0, %v298_v15  ;;  %v384_v56 = vcombine.low %v368_v8, %v369_v12 }
  0xf0   :  { %v385_v57 = vcombine.high %v368_v8, %v369_v12  ;;  %v373_v3 = vadd.f32 %v361_v2, %v341_v55 }
  0xf1   :  { %v392_v60 = vrot.slane %v382_v16, %v3213_v7  ;;  %v399_v62 = vrot.slane %v383_v17, %v3213_v7  ;;  %v418_v5 = vcombine.low %v370_v13, %v371_v52  ;;  %v419_v6 = vcombine.high %v370_v13, %v371_v52 }
  0xf2   :  { %v406_v59 = vrot.slane %v384_v56, %v3213_v7  ;;  %v413_v61 = vrot.slane %v385_v57, %v3213_v7  ;;  %v420_v10 = vcombine.low %v372_v18, %v373_v3  ;;  %v421_v11 = vcombine.high %v372_v18, %v373_v3 }
  0xf3   :  { %v428_v4 = vrot.slane %v418_v5, %v3213_v7  ;;  %v435_v63 = vrot.slane %v419_v6, %v3213_v7 }
  0xf4   :  { %v414_v0 = vcombine.low %v392_v60, %v406_v59  ;;  %v415_v9 = vcombine.high %v392_v60, %v406_v59  ;;  %v416_v8 = vcombine.low %v399_v62, %v413_v61  ;;  %v417_v2 = vcombine.high %v399_v62, %v413_v61 }
  0xf5   :  { %v442_v12 = vrot.slane %v420_v10, %v3213_v7  ;;  %v449_v14 = vrot.slane %v421_v11, %v3213_v7 }
  0xf6   :  { %462 = vst [vmem:[#allocation2] sm:$0xff] %v414_v0  ;;  %463 = vst [vmem:[#allocation2 + $0x8] sm:$0xff] %v415_v9 }
  0xf7   :  { %464 = vst [vmem:[#allocation2 + $0x10] sm:$0xff] %v416_v8  ;;  %465 = vst [vmem:[#allocation2 + $0x18] sm:$0xff] %v417_v2  ;;  %v450_v13 = vcombine.low %v428_v4, %v442_v12  ;;  %v451_v15 = vcombine.high %v428_v4, %v442_v12  ;;  %v452_v16 = vcombine.low %v435_v63, %v449_v14 }
  0xf8   :  { %v453_v17 = vcombine.high %v435_v63, %v449_v14 }
  0xf9   :  { %466 = vst [vmem:[#allocation2 + $0x20] sm:$0xff] %v450_v13  ;;  %467 = vst [vmem:[#allocation2 + $0x28] sm:$0xff] %v451_v15 }
  0xfa   :  { %468 = vst [vmem:[#allocation2 + $0x30] sm:$0xff] %v452_v16  ;;  %469 = vst [vmem:[#allocation2 + $0x38] sm:$0xff] %v453_v17 }
  0xfb LB: > { %v2397_v59 = vcombine.high %v3038_v20, %v3048_v22  ;;  %v2399_v60 = vcombine.high %v3043_v21, %v3053_v23  ;;  %v2396_v18 = vcombine.low %v3038_v20, %v3048_v22  ;;  %v2398_v52 = vcombine.low %v3043_v21, %v3053_v23  ;;  %s2520_s5 = sshll.u32 %s2870_s4, 3  ;;  %s807_s21 = ssub.s32 7, %s2870_s4  ;;  %s2870_s4 = sphi %s3223_s4, %s509_s4  }
  0xfc   : > { %v2401_v55 = vcombine.high %v3058_v24, %v3068_v26  ;;  %v2403_v56 = vcombine.high %v3063_v25, %v3073_v27  ;;  %v2400_v57 = vcombine.low %v3058_v24, %v3068_v26  ;;  %v2402_v3 = vcombine.low %v3063_v25, %v3073_v27  ;;  %s756_s20 = scalar_lea.vmem [#allocation2], %s2520_s5  ;;  %s805_s22 = scalar_lea.vmem [#allocation3], %s2870_s4 }
  0xfd   : > { %672 = vmatprep.subr.bf16.mxu0 %v2397_v59  ;;  %713 = vmatprep.subr.bf16.mxu1 %v2399_v60  ;;  %v2405_v62 = vcombine.high %v3078_v28, %v3088_v30  ;;  %v2407_v5 = vcombine.high %v3083_v29, %v3093_v31  ;;  %v2879_v6 = vmov 0   ;;  %v2404_v61 = vcombine.low %v3078_v28, %v3088_v30  ;;  %s808_s23 = scalar_lea.vmem [#allocation4], %s807_s21  ;;  %s509_s4 = sadd.s32 1, %s2870_s4  }
  0xfe   : > { %673 = vmatpush1.bf16.msra.mxu0 %v2396_v18  ;;  %714 = vmatpush1.bf16.msra.mxu1 %v2398_v52  ;;  %v2406_v10 = vcombine.low %v3083_v29, %v3093_v31  ;;  %v2409_v11 = vcombine.high %v3098_v32, %v3108_v34  ;;  %v2411_v4 = vcombine.high %v3103_v33, %v3113_v35  ;;  %p506_p0 = scmp.ge.s32.totalorder %s509_s4, 8  }
  0xff   : > { %674 = vmatprep.subr.bf16.mxu0 %v2401_v55  ;;  %715 = vmatprep.subr.bf16.mxu1 %v2403_v56  ;;  %v2408_v63 = vcombine.low %v3098_v32, %v3108_v34  ;;  %v2410_v0 = vcombine.low %v3103_v33, %v3113_v35  ;;  %v2413_v9 = vcombine.high %v3118_v36, %v3128_v38  ;;  %vm2880_vm1 = vmmov (%p506_p0), 0   ;;  %v3322_v20 = vld [vmem:[%s3878_s7 + $0x8] sm:$0xff] (%p506_p0)   ;;  %v3336_v22 = vld [vmem:[%s3878_s7 + $0x10] sm:$0xff] (%p506_p0)   ;;  %v3350_v24 = vld [vmem:[%s3878_s7 + $0x18] sm:$0xff] (%p506_p0)  }
 0x100   : > { %704 = vmatprep.mubr.bf16.mxu0 %v2879_v6  ;;  %745 = vmatprep.mubr.bf16.mxu1 %v2879_v6  ;;  %v2415_v8 = vcombine.high %v3123_v37, %v3133_v39  ;;  %v2412_v2 = vcombine.low %v3118_v36, %v3128_v38  ;;  %v2414_v12 = vcombine.low %v3123_v37, %v3133_v39  ;;  %v3329_v21 = vld [vmem:[%s3877_s6 + $0x8] sm:$0xff] (%p506_p0)   ;;  %v3343_v23 = vld [vmem:[%s3877_s6 + $0x10] sm:$0xff] (%p506_p0)   ;;  %v3357_v25 = vld [vmem:[%s3877_s6 + $0x18] sm:$0xff] (%p506_p0)   ;;  %v2881_v38 = vmov (%p506_p0), 1966171168  }
 0x101   : > { %v2417_v14 = vcombine.high %v3138_v40, %v3148_v42  ;;  %v2419_v13 = vcombine.high %v3143_v41, %v3153_v43  ;;  %v2416_v15 = vcombine.low %v3138_v40, %v3148_v42  ;;  %v2418_v16 = vcombine.low %v3143_v41, %v3153_v43  ;;  %v3364_v26 = vld [vmem:[%s3878_s7 + $0x20] sm:$0xff] (%p506_p0)   ;;  %v3377_v28 = vld [vmem:[%s3878_s7 + $0x28] sm:$0xff] (%p506_p0)   ;;  %v3391_v43 = vld [vmem:[%s3878_s7 + $0x30] sm:$0xff] (%p506_p0)  }
 0x102   : > { %675 = vmatpush1.bf16.msra.mxu0 %v2400_v57  ;;  %716 = vmatpush1.bf16.msra.mxu1 %v2402_v3  ;;  %v2421_v17 = vcombine.high %v3158_v44, %v3168_v46  ;;  %v2423_v59 = vcombine.high %v3163_v45, %v3173_v47  ;;  %v2420_v60 = vcombine.low %v3158_v44, %v3168_v46  ;;  %v510_v3 = vld [vmem:[#allocation5] sm:$0x3]  ;;  %v3371_v27 = vld [vmem:[%s3877_s6 + $0x20] sm:$0xff] (%p506_p0)   ;;  %v3382_v32 = vld [vmem:[%s3877_s6 + $0x28] sm:$0xff] (%p506_p0)   ;;  %v871_v39 = vunpack.c.l.s4 (%p506_p0), %v2881_v38 }
 0x103   : > { %676 = vmatprep.subr.bf16.mxu0 %v2405_v62  ;;  %717 = vmatprep.subr.bf16.mxu1 %v2407_v5  ;;  %v2422_v18 = vcombine.low %v3163_v45, %v3173_v47  ;;  %v2425_v52 = vcombine.high %v3178_v48, %v3188_v50  ;;  %v2427_v55 = vcombine.high %v3183_v49, %v3193_v51 }
 0x104   : > { %v2424_v56 = vcombine.low %v3178_v48, %v3188_v50  ;;  %v2426_v57 = vcombine.low %v3183_v49, %v3193_v51  ;;  %v511_v62 = vpack.c.bf16 %v510_v3, %v510_v3  ;;  %v3396_v48 = vld [vmem:[%s3877_s6 + $0x30] sm:$0xff] (%p506_p0)  }
 0x106   : > { %677 = vmatpush1.bf16.msra.mxu0 %v2404_v61  ;;  %718 = vmatpush1.bf16.msra.mxu1 %v2406_v10 }
 0x107   : > { %678 = vmatprep.subr.bf16.mxu0 %v2409_v11  ;;  %719 = vmatprep.subr.bf16.mxu1 %v2411_v4 }
 0x10a   : > { %679 = vmatpush1.bf16.msra.mxu0 %v2408_v63  ;;  %720 = vmatpush1.bf16.msra.mxu1 %v2410_v0 }
 0x10b   : > { %680 = vmatprep.subr.bf16.mxu0 %v2413_v9  ;;  %721 = vmatprep.subr.bf16.mxu1 %v2415_v8 }
 0x10e   : > { %681 = vmatpush1.bf16.msra.mxu0 %v2412_v2  ;;  %722 = vmatpush1.bf16.msra.mxu1 %v2414_v12 }
 0x10f   : > { %682 = vmatprep.subr.bf16.mxu0 %v2417_v14  ;;  %723 = vmatprep.subr.bf16.mxu1 %v2419_v13  ;;  %v757_v14 = vld [vmem:[%s756_s20] sm:$0xff] }
 0x112   : > { %683 = vmatpush1.bf16.msra.mxu0 %v2416_v15  ;;  %724 = vmatpush1.bf16.msra.mxu1 %v2418_v16 }
 0x113   : > { %684 = vmatprep.subr.bf16.mxu0 %v2421_v17  ;;  %725 = vmatprep.subr.bf16.mxu1 %v2423_v59 }
 0x116   : > { %685 = vmatpush1.bf16.msra.mxu0 %v2420_v60  ;;  %726 = vmatpush1.bf16.msra.mxu1 %v2422_v18 }
 0x117   : > { %686 = vmatprep.subr.bf16.mxu0 %v2425_v52  ;;  %727 = vmatprep.subr.bf16.mxu1 %v2427_v55  ;;  %v791_v52 = vld [vmem:[#allocation6] sm:$0x3] }
 0x11a   : > { %687 = vmatpush1.bf16.msra.mxu0 %v2424_v56  ;;  %728 = vmatpush1.bf16.msra.mxu1 %v2426_v57 }
 0x11b   :  { %2576 = vmatprep.subr.bf16.mxu0 (%p506_p0), %v2877_v19  ;;  %2596 = vmatprep.subr.bf16.mxu1 (%p506_p0), %v2877_v19 }
 0x11d   : > { %705 = vmatmul.mubr.bf16.vlgmr.msra.gmra.mrb[0].mxu0 %v511_v62  ;;  %746 = vmatmul.mubr.bf16.vlgmr.msra.gmra.mrb[0].mxu1 %v511_v62 }
 0x11e   :  { %2592 = vmatprep.mubr.msk.bf16.mxu0 (%p506_p0), %vm2880_vm1, %v2877_v19  ;;  %2612 = vmatprep.mubr.msk.bf16.mxu1 (%p506_p0), %vm2880_vm1, %v2877_v19 }
 0x1f0   : > { %v706_v5 = vpop.f32.mrb[0].mxu0  ;;  %v747_v6 = vpop.f32.mrb[0].mxu1 }
 0x1f1   : > { %v708_v61 = vpop.f32.mrb[1].mxu0  ;;  %v749_v10 = vpop.f32.mrb[1].mxu1 }
 0x1f2   : > { %v762_v11 = vcombine.low %v706_v5, %v708_v61  ;;  %v763_v4 = vcombine.low %v747_v6, %v749_v10  ;;  %v710_v63 = vpop.f32.mrb[2].mxu0  ;;  %v751_v0 = vpop.f32.mrb[2].mxu1 }
 0x1f3   : > { %v711_v9 = vpop.f32.mrb[3].mxu0  ;;  %v752_v8 = vpop.f32.mrb[3].mxu1  ;;  %v872_v63 = vunpack.c.0.s8 (%p506_p0), %v871_v39 }
 0x1f4   : > { %v770_v2 = vrot.slane %v762_v11, %v3213_v7  ;;  %v777_v12 = vrot.slane %v763_v4, %v3213_v7  ;;  %v3305_v11 = vld [vmem:[%s3878_s7] sm:$0xff] (%p506_p0)  }
 0x1f5   :  { %v3312_v4 = vld [vmem:[%s3877_s6] sm:$0xff] (%p506_p0)   ;;  %2577 = vmatpush3.bf16.msra.mxu0 (%p506_p0), %v3305_v11 }
 0x1f6   : > { %v778_v13 = vcombine.low %v770_v2, %v777_v12  ;;  %2597 = vmatpush3.bf16.msra.mxu1 (%p506_p0), %v3312_v4  ;;  %2578 = vmatprep.subr.bf16.mxu0 (%p506_p0), %v2877_v19 }
 0x1f7   :  { %2598 = vmatprep.subr.bf16.mxu1 (%p506_p0), %v2877_v19 }
 0x1f8   : > { %v780_v15 = vadd.f32 %v778_v13, %v757_v14  ;;  %v3402_v13 = vsub.s32 (%p506_p0), %v872_v63, %v3195_v53 }
 0x1f9   :  { %2579 = vmatpush3.bf16.msra.mxu0 (%p506_p0), %v3322_v20 }
 0x1fa   : > { %v2430_v16 = vmul.f32 -1.442695, %v780_v15  ;;  %v788_v60 = vrot.slane %v780_v15, 6  ;;  %2599 = vmatpush3.bf16.msra.mxu1 (%p506_p0), %v3329_v21  ;;  %2580 = vmatprep.subr.bf16.mxu0 (%p506_p0), %v2877_v19  ;;  %v2786_v15 = vld [vmem:[%s3878_s7 + $0x38] sm:$0xff] (%p506_p0)  }
 0x1fb   :  { %2600 = vmatprep.subr.bf16.mxu1 (%p506_p0), %v2877_v19 }
 0x1fc   : > { %2764 = vpow2.f32 %v2430_v16 }
 0x1fd   :  { %2581 = vmatpush3.bf16.msra.mxu0 (%p506_p0), %v3336_v22 }
 0x1fe   :  { %2601 = vmatpush3.bf16.msra.mxu1 (%p506_p0), %v3343_v23  ;;  %2582 = vmatprep.subr.bf16.mxu0 (%p506_p0), %v2877_v19 }
 0x1ff   :  { %2602 = vmatprep.subr.bf16.mxu1 (%p506_p0), %v2877_v19 }
 0x201   :  { %2583 = vmatpush3.bf16.msra.mxu0 (%p506_p0), %v3350_v24 }
 0x202   :  { %2603 = vmatpush3.bf16.msra.mxu1 (%p506_p0), %v3357_v25  ;;  %2584 = vmatprep.subr.bf16.mxu0 (%p506_p0), %v2877_v19 }
 0x203   :  { %2604 = vmatprep.subr.bf16.mxu1 (%p506_p0), %v2877_v19 }
 0x205   :  { %2585 = vmatpush3.bf16.msra.mxu0 (%p506_p0), %v3364_v26 }
 0x206   : > { %v2765_v17 = vpop.eup %2764  ;;  %2605 = vmatpush3.bf16.msra.mxu1 (%p506_p0), %v3371_v27  ;;  %2586 = vmatprep.subr.bf16.mxu0 (%p506_p0), %v2877_v19 }
 0x207   : > { %v784_v59 = vadd.f32 1.0, %v2765_v17  ;;  %2606 = vmatprep.subr.bf16.mxu1 (%p506_p0), %v2877_v19 }
 0x209   : > { %2766 = vrcp.f32 %v784_v59  ;;  %2587 = vmatpush3.bf16.msra.mxu0 (%p506_p0), %v3377_v28 }
 0x20a   : > { %2768 = vtanh.f32 %v788_v60  ;;  %2607 = vmatpush3.bf16.msra.mxu1 (%p506_p0), %v3382_v32  ;;  %2588 = vmatprep.subr.bf16.mxu0 (%p506_p0), %v2877_v19 }
 0x20b   :  { %2608 = vmatprep.subr.bf16.mxu1 (%p506_p0), %v2877_v19 }
 0x20d   :  { %2589 = vmatpush3.bf16.msra.mxu0 (%p506_p0), %v3391_v43 }
 0x20e   :  { %2609 = vmatpush3.bf16.msra.mxu1 (%p506_p0), %v3396_v48  ;;  %2590 = vmatprep.subr.bf16.mxu0 (%p506_p0), %v2877_v19 }
 0x20f   :  { %2610 = vmatprep.subr.bf16.mxu1 (%p506_p0), %v2877_v19 }
 0x211   :  { %2591 = vmatpush3.bf16.msra.mxu0 (%p506_p0), %v2786_v15 }
 0x212   :  { %2616 = vmatprep.subr.bf16.mxu0 (%p506_p0), %v2877_v19 }
 0x213   : > { %v2767_v18 = vpop.eup %2766 }
 0x214   : > { %v793_v55 = vrot.slane %v2767_v18, 2  ;;  %v2769_v56 = vpop.eup %2768  ;;  %v799_v5 = vrot.slane %v2767_v18, 4 }
 0x215   : > { %v796_v3 = vmul.f32 %v2769_v56, %v2767_v18 }
 0x216   : > { %v795_v57 = vmul.f32 %v793_v55, %v791_v52 }
 0x218   : > { %v797_v62 = vadd.f32 %v796_v3, %v795_v57  ;;  %v2787_v57 = vld [vmem:[%s3877_s6 + $0x38] sm:$0xff] (%p506_p0)  }
 0x219   :  { %2611 = vmatpush3.bf16.msra.mxu1 (%p506_p0), %v2787_v57 }
 0x21a   : > { %2770 = vtanh.f32 %v797_v62  ;;  %802 = vst [vmem:[#allocation6] sm:$0x3] %v797_v62  ;;  %2636 = vmatprep.subr.bf16.mxu1 (%p506_p0), %v2877_v19 }
 0x21b   :  { %1648 = vst [vmem:[#allocation6] sm:$0x3] (%p506_p0), %v2877_v19 }
 0x223   :  { %508 = sbr.rel (!%p506_p0) target bundleno = 251 (0xfb), region = 104 }
 0x224   : > { %v2771_v6 = vpop.eup %2770 }
 0x225   : > { %v801_v61 = vmul.f32 %v2771_v6, %v799_v5 }
 0x227   : > { %803 = vst [vmem:[#allocation5] sm:$0x3] %v801_v61  ;;  %v804_v10 = vpack.c.bf16 %v801_v61, %v801_v61 }
 0x228   :  { %1647 = vst [vmem:[#allocation5] sm:$0x3] (%p506_p0), %v2877_v19 }
 0x229   : > { %806 = vst [vmem:[%s805_s22] sm:$0x1] %v804_v10  ;;  %809 = vst [vmem:[%s808_s23] sm:$0x1] %v804_v10 }
 0x230   :  { %v818_v29 = vld [vmem:[#allocation4] sm:$0x1]  ;;  %v819_v30 = vld [vmem:[#allocation4 + $0x1] sm:$0x1]  ;;  %v820_v31 = vld [vmem:[#allocation4 + $0x2] sm:$0x1] }
 0x231   :  { %v821_v33 = vld [vmem:[#allocation4 + $0x3] sm:$0x1]  ;;  %v822_v34 = vld [vmem:[#allocation4 + $0x4] sm:$0x1]  ;;  %v823_v35 = vld [vmem:[#allocation4 + $0x5] sm:$0x1]  ;;  %v866_v44 = vcombine.low %v818_v29, %v819_v30 }
 0x232   :  { %v824_v36 = vld [vmem:[#allocation4 + $0x6] sm:$0x1]  ;;  %v825_v37 = vld [vmem:[#allocation4 + $0x7] sm:$0x1]  ;;  %v810_v40 = vld [vmem:[#allocation3] sm:$0x1]  ;;  %v867_v49 = vcombine.low %v820_v31, %v821_v33  ;;  %v868_v50 = vcombine.low %v822_v34, %v823_v35 }
 0x233   :  { %v811_v41 = vld [vmem:[#allocation3 + $0x1] sm:$0x1]  ;;  %v812_v42 = vld [vmem:[#allocation3 + $0x2] sm:$0x1]  ;;  %v813_v45 = vld [vmem:[#allocation3 + $0x3] sm:$0x1]  ;;  %v869_v51 = vcombine.low %v824_v36, %v825_v37  ;;  %v876_v16 = vrot.slane %v866_v44, %v3402_v13 }
 0x234   :  { %v814_v46 = vld [vmem:[#allocation3 + $0x4] sm:$0x1]  ;;  %v815_v47 = vld [vmem:[#allocation3 + $0x5] sm:$0x1]  ;;  %v816_v0 = vld [vmem:[#allocation3 + $0x6] sm:$0x1]  ;;  %v1013_v8 = vcombine.low %v810_v40, %v811_v41  ;;  %v1014_v2 = vcombine.low %v812_v42, %v813_v45  ;;  %v883_v17 = vrot.slane %v867_v49, %v3402_v13  ;;  %v890_v59 = vrot.slane %v868_v50, %v3402_v13 }
 0x235   :  { %v817_v9 = vld [vmem:[#allocation3 + $0x7] sm:$0x1]  ;;  %v1015_v12 = vcombine.low %v814_v46, %v815_v47  ;;  %v897_v60 = vrot.slane %v869_v51, %v3402_v13  ;;  %v2447_v34 = vld [vmem:[%s3879_s8] ss:$0 sm:$0xff] }
 0x236   :  { %v1016_v14 = vcombine.low %v816_v0, %v817_v9  ;;  %v1023_v18 = vrot.slane %v1013_v8, %v3402_v13  ;;  %v1030_v52 = vrot.slane %v1014_v2, %v3402_v13  ;;  %v898_v3 = vcombine.low %v876_v16, %v883_v17  ;;  %v2808_v17 = vld [vmem:[%s3880_s9 + $0x24] ss:$16 sps:$4 sm:$0xff]  }
 0x237   :  { %v1037_v55 = vrot.slane %v1015_v12, %v3402_v13  ;;  %v899_v62 = vcombine.low %v890_v59, %v897_v60  ;;  %v2811_v59 = vld [vmem:[%s3880_s9 + $0x2c] ss:$16 sps:$4 sm:$0xff]   ;;  %v2806_v60 = vld [vmem:[%s3880_s9 + $0x20] ss:$16 sps:$4 sm:$0xff]  }
 0x238   :  { %v1044_v56 = vrot.slane %v1016_v14, %v3402_v13  ;;  %v1045_v5 = vcombine.low %v1023_v18, %v1030_v52  ;;  %v906_v61 = vrot.slane %v898_v3, %v3402_v13  ;;  %v2800_v14 = vld [vmem:[%s3880_s9] ss:$16 sps:$4 sm:$0xff]   ;;  %v2809_v18 = vld [vmem:[%s3880_s9 + $0x28] ss:$16 sps:$4 sm:$0xff]  }
 0x239   :  { %v913_v10 = vrot.slane %v899_v62, %v3402_v13  ;;  %v3523_v52 = vld [vmem:[%s3882_s11] sm:$0xff]  ;;  %v3548_v3 = vld [vmem:[%s3882_s11 + $0x28] sm:$0xff]  ;;  %v3553_v62 = vld [vmem:[%s3882_s11 + $0x30] sm:$0xff] }
 0x23a   :  { %v1046_v6 = vcombine.low %v1037_v55, %v1044_v56  ;;  %v1053_v29 = vrot.slane %v1045_v5, %v3402_v13  ;;  %v3528_v55 = vld [vmem:[%s3882_s11 + $0x8] sm:$0xff]  ;;  %v3538_v56 = vld [vmem:[%s3882_s11 + $0x18] sm:$0xff] }
 0x23b   :  { %v914_v31 = vcombine.low %v906_v61, %v913_v10  ;;  %v3558_v5 = vld [vmem:[%s3882_s11 + $0x38] sm:$0xff]  ;;  %v3568_v61 = vld [vmem:[%s3882_s11 + $0x48] sm:$0xff]  ;;  %v3573_v10 = vld [vmem:[%s3882_s11 + $0x50] sm:$0xff] }
 0x23c   :  { %v1060_v30 = vrot.slane %v1046_v6, %v3402_v13  ;;  %v3563_v6 = vld [vmem:[%s3882_s11 + $0x40] sm:$0xff] }
 0x23d   :  { %2593 = vmatmul.mubr.bf16.vlgmr.msra.gmra.mrb[0].mxu0 %v914_v31 }
 0x23e   :  { %v1061_v33 = vcombine.low %v1053_v29, %v1060_v30  ;;  %2617 = vmatpush3.bf16.msra.mxu0 %v3305_v11  ;;  %2632 = vmatprep.mubr.msk.bf16.mxu0 %vm2880_vm1, %v2877_v19  ;;  %v2790_v11 = vld [vmem:[%s3881_s10 + $0x4] ss:$16 sps:$4 sm:$0xff]   ;;  %v3578_v29 = vld [vmem:[%s3882_s11 + $0x58] sm:$0xff] }
 0x23f   :  { %2618 = vmatprep.subr.bf16.mxu0 %v2877_v19  ;;  %v3583_v30 = vld [vmem:[%s3882_s11 + $0x60] sm:$0xff] }
 0x240   :  { %2613 = vmatmul.mubr.bf16.vlgmr.msra.gmra.mrb[0].mxu1 %v1061_v33 }
 0x241   :  { %2637 = vmatpush3.bf16.msra.mxu1 %v3312_v4  ;;  %2652 = vmatprep.mubr.msk.bf16.mxu1 %vm2880_vm1, %v2877_v19  ;;  %v2793_v4 = vld [vmem:[%s3881_s10 + $0xc] ss:$16 sps:$4 sm:$0xff]  }
 0x242   :  { %2638 = vmatprep.subr.bf16.mxu1 %v2877_v19  ;;  %2619 = vmatpush3.bf16.msra.mxu0 %v3322_v20  ;;  %v2788_v20 = vld [vmem:[%s3881_s10] ss:$16 sps:$4 sm:$0xff]  }
 0x243   :  { %2620 = vmatprep.subr.bf16.mxu0 %v2877_v19 }
 0x245   :  { %2639 = vmatpush3.bf16.msra.mxu1 %v3329_v21  ;;  %v2791_v21 = vld [vmem:[%s3881_s10 + $0x8] ss:$16 sps:$4 sm:$0xff]  }
 0x246   :  { %2640 = vmatprep.subr.bf16.mxu1 %v2877_v19  ;;  %2621 = vmatpush3.bf16.msra.mxu0 %v3336_v22  ;;  %v2796_v22 = vld [vmem:[%s3881_s10 + $0x24] ss:$16 sps:$4 sm:$0xff]  }
 0x247   :  { %2622 = vmatprep.subr.bf16.mxu0 %v2877_v19 }
 0x249   :  { %2641 = vmatpush3.bf16.msra.mxu1 %v3343_v23  ;;  %v2799_v23 = vld [vmem:[%s3881_s10 + $0x2c] ss:$16 sps:$4 sm:$0xff]  }
 0x24a   :  { %2642 = vmatprep.subr.bf16.mxu1 %v2877_v19  ;;  %2623 = vmatpush3.bf16.msra.mxu0 %v3350_v24  ;;  %v2794_v24 = vld [vmem:[%s3881_s10 + $0x20] ss:$16 sps:$4 sm:$0xff]  }
 0x24b   :  { %2624 = vmatprep.subr.bf16.mxu0 %v2877_v19 }
 0x24d   :  { %2643 = vmatpush3.bf16.msra.mxu1 %v3357_v25  ;;  %v2797_v25 = vld [vmem:[%s3881_s10 + $0x28] ss:$16 sps:$4 sm:$0xff]  }
 0x24e   :  { %2644 = vmatprep.subr.bf16.mxu1 %v2877_v19  ;;  %2625 = vmatpush3.bf16.msra.mxu0 %v3364_v26  ;;  %v2802_v26 = vld [vmem:[%s3880_s9 + $0x4] ss:$16 sps:$4 sm:$0xff]  }
 0x24f   :  { %2626 = vmatprep.subr.bf16.mxu0 %v2877_v19 }
 0x251   :  { %2645 = vmatpush3.bf16.msra.mxu1 %v3371_v27  ;;  %v2805_v27 = vld [vmem:[%s3880_s9 + $0xc] ss:$16 sps:$4 sm:$0xff]  }
 0x252   :  { %2646 = vmatprep.subr.bf16.mxu1 %v2877_v19  ;;  %2627 = vmatpush3.bf16.msra.mxu0 %v3377_v28 }
 0x253   :  { %2628 = vmatprep.subr.bf16.mxu0 %v2877_v19 }
 0x255   :  { %2647 = vmatpush3.bf16.msra.mxu1 %v3382_v32 }
 0x256   :  { %2648 = vmatprep.subr.bf16.mxu1 %v2877_v19  ;;  %2629 = vmatpush3.bf16.msra.mxu0 %v3391_v43 }
 0x257   :  { %2630 = vmatprep.subr.bf16.mxu0 %v2877_v19 }
 0x259   :  { %2649 = vmatpush3.bf16.msra.mxu1 %v3396_v48 }
 0x25a   :  { %2650 = vmatprep.subr.bf16.mxu1 %v2877_v19  ;;  %2631 = vmatpush3.bf16.msra.mxu0 %v2786_v15  ;;  %v2803_v15 = vld [vmem:[%s3880_s9 + $0x8] ss:$16 sps:$4 sm:$0xff]  }
 0x25b   :  { %1306 = vmatprep.subr.bf16.mxu0 %v2790_v11  ;;  %v3598_v11 = vld [vmem:[%s3882_s11 + $0x78] sm:$0xff] }
 0x25d   :  { %2651 = vmatpush3.bf16.msra.mxu1 %v2787_v57  ;;  %2633 = vmatmul.mubr.bf16.vlgmr.msra.gmra.mrb[4].mxu0 %v1061_v33  ;;  %v3543_v57 = vld [vmem:[%s3882_s11 + $0x20] sm:$0xff]  ;;  %v3593_v33 = vld [vmem:[%s3882_s11 + $0x70] sm:$0xff] }
 0x25e   :  { %1338 = vmatprep.mubr.bf16.mxu0 %v2876_v1  ;;  %1349 = vmatprep.subr.bf16.mxu1 %v2793_v4  ;;  %v3603_v4 = vld [vmem:[%s3882_s11 + $0x80] sm:$0xff] }
 0x25f   :  { %1307 = vmatpush1.bf16.msra.mxu0 %v2788_v20  ;;  %v3608_v20 = vld [vmem:[%s3882_s11 + $0x88] sm:$0xff] }
 0x260   :  { %2653 = vmatmul.mubr.bf16.vlgmr.msra.gmra.mrb[4].mxu1 %v914_v31  ;;  %1308 = vmatprep.subr.bf16.mxu0 %v2796_v22  ;;  %v3588_v31 = vld [vmem:[%s3882_s11 + $0x68] sm:$0xff]  ;;  %v3618_v22 = vld [vmem:[%s3882_s11 + $0x98] sm:$0xff] }
 0x261   :  { %1381 = vmatprep.mubr.bf16.mxu1 %v2876_v1  ;;  %1350 = vmatpush1.bf16.msra.mxu1 %v2791_v21  ;;  %v3613_v21 = vld [vmem:[%s3882_s11 + $0x90] sm:$0xff] }
 0x262   :  { %1351 = vmatprep.subr.bf16.mxu1 %v2799_v23  ;;  %v3623_v23 = vld [vmem:[%s3882_s11 + $0xa0] sm:$0xff] }
 0x263   :  { %1309 = vmatpush1.bf16.msra.mxu0 %v2794_v24  ;;  %v3628_v24 = vld [vmem:[%s3882_s11 + $0xa8] sm:$0xff] }
 0x264   :  { %1435 = vmatprep.subr.bf16.mxu0 %v2802_v26  ;;  %v3638_v26 = vld [vmem:[%s3882_s11 + $0xb8] sm:$0xff] }
 0x265   :  { %1352 = vmatpush1.bf16.msra.mxu1 %v2797_v25  ;;  %v3633_v25 = vld [vmem:[%s3882_s11 + $0xb0] sm:$0xff] }
 0x266   :  { %1478 = vmatprep.subr.bf16.mxu1 %v2805_v27  ;;  %v3643_v27 = vld [vmem:[%s3882_s11 + $0xc0] sm:$0xff] }
 0x310   :  { %v998_v28 = vpop.f32.mrb[0].mxu0 }
 0x311   :  { %v2594_v35 = vpop.f32.mrb[1].mxu0 }
 0x312   :  { %v1001_v38 = vpop.f32.mrb[2].mxu0  ;;  %v3663_v35 = vld [vmem:[%s3882_s11 + $0xe0] sm:$0xff] }
 0x313   :  { %v1145_v32 = vpop.f32.mrb[0].mxu1  ;;  %v2595_v40 = vpop.f32.mrb[3].mxu0 }
 0x314   :  { %v1146_v36 = vadd.f32 %v1145_v32, %v998_v28  ;;  %v2614_v37 = vpop.f32.mrb[1].mxu1  ;;  %v3648_v28 = vld [vmem:[%s3882_s11 + $0xc8] sm:$0xff]  ;;  %v3653_v32 = vld [vmem:[%s3882_s11 + $0xd0] sm:$0xff] }
 0x315   :  { %v1148_v39 = vpop.f32.mrb[2].mxu1  ;;  %v3673_v37 = vld [vmem:[%s3882_s11 + $0xf0] sm:$0xff] }
 0x316   :  { %v1159_v41 = vadd.f32 %v2447_v34, %v1146_v36  ;;  %v1149_v42 = vadd.f32 %v1148_v39, %v1001_v38  ;;  %v2615_v43 = vpop.f32.mrb[3].mxu1  ;;  %v3668_v36 = vld [vmem:[%s3882_s11 + $0xe8] sm:$0xff]  ;;  %v3678_v38 = vld [vmem:[%s3882_s11 + $0xf8] sm:$0xff]  ;;  %v1521_v39 = vld [vmem:[%s3883_s12] sm:$0xf] }
 0x317   :  { %v1526_v40 = vrot.slane %v1521_v39, %v348_v54 }
 0x318   :  { %v1160_v44 = vadd.f32 %v2447_v34, %v1149_v42  ;;  %v3892_v42 = vsub.s32 1, %v3195_v53 }
 0x31a   :  { %v1245_v45 = vpack.c.bf16 %v1160_v44, %v1159_v41  ;;  %v1534_v41 = vrot.slane %v1521_v39, %v356_v58  ;;  %v1530_v43 = vrot.slane %v1521_v39, %v3892_v42  ;;  %v3893_v44 = vsub.s32 3, %v3195_v53 }
 0x330   :  { %v1195_v46 = vpop.f32.mrb[4].mxu0 }
 0x331   :  { %v2634_v48 = vpop.f32.mrb[5].mxu0 }
 0x332   :  { %v1198_v51 = vpop.f32.mrb[6].mxu0 }
 0x333   :  { %v1236_v47 = vpop.f32.mrb[4].mxu1  ;;  %v2635_v0 = vpop.f32.mrb[7].mxu0 }
 0x334   :  { %v1237_v49 = vadd.f32 %v1236_v47, %v1195_v46  ;;  %v2654_v50 = vpop.f32.mrb[5].mxu1 }
 0x335   :  { %v1239_v63 = vpop.f32.mrb[6].mxu1 }
 0x336   :  { %v1240_v9 = vadd.f32 %v1239_v63, %v1198_v51  ;;  %v2655_v8 = vpop.f32.mrb[7].mxu1  ;;  %v1243_v2 = vadd.f32 %v2447_v34, %v1237_v49 }
 0x338   :  { %v1244_v12 = vadd.f32 %v2447_v34, %v1240_v9  ;;  %v3658_v34 = vld [vmem:[%s3882_s11 + $0xd8] sm:$0xff] }
 0x33a   :  { %v1246_v16 = vpack.c.bf16 %v1244_v12, %v1243_v2 }
 0x33c   :  { %2456 = vmatmul.mubr.msk.bf16.vlgmr.msra.gmra.mrb[8].mxu0 %vm120_vm0, %v1246_v16  ;;  %2457 = vmatmul.mubr.msk.bf16.vlgmr.msra.gmra.mrb[8].mxu1 %vm120_vm0, %v1246_v16 }
 0x33d   :  { %1436 = vmatpush1.bf16.msra.mxu0 %v2800_v14  ;;  %1479 = vmatpush1.bf16.msra.mxu1 %v2803_v15 }
 0x33e   :  { %1437 = vmatprep.subr.bf16.mxu0 %v2808_v17  ;;  %1480 = vmatprep.subr.bf16.mxu1 %v2811_v59 }
 0x33f   :  { %1467 = vmatprep.mubr.bf16.mxu0 %v2876_v1  ;;  %1510 = vmatprep.mubr.bf16.mxu1 %v2876_v1  ;;  %v3533_v1 = vld [vmem:[%s3882_s11 + $0x10] sm:$0xff]  ;;  %s3699_s11 = smov 0  }
 0x341   :  { %1438 = vmatpush1.bf16.msra.mxu0 %v2806_v60  ;;  %1481 = vmatpush1.bf16.msra.mxu1 %v2809_v18 }
 0x348   :  { %2466 = vmatmul.mubr.msk.bf16.vlgmr.msra.gmra.mrb[8].mxu0 %vm120_vm0, %v1245_v45  ;;  %2467 = vmatmul.mubr.msk.bf16.vlgmr.msra.gmra.mrb[8].mxu1 %vm120_vm0, %v1245_v45  ;;  %v1538_v45 = vrot.slane %v1521_v39, %v3893_v44 }
 0x41b   :  { %v1469_v46 = vpop.f32.mrb[8].mxu0  ;;  %v1512_v47 = vpop.f32.mrb[8].mxu1 }
 0x41c   :  { %v1543_v48 = vadd.f32 %v1526_v40, %v1469_v46  ;;  %v1545_v49 = vadd.f32 %v1534_v41, %v1512_v47  ;;  %v1471_v50 = vpop.f32.mrb[9].mxu0  ;;  %v1514_v51 = vpop.f32.mrb[9].mxu1 }
 0x41d   :  { %v1544_v63 = vadd.f32 %v1530_v43, %v1471_v50  ;;  %v1546_v0 = vadd.f32 %v1538_v45, %v1514_v51  ;;  %v1473_v9 = vpop.f32.mrb[10].mxu0  ;;  %v1516_v8 = vpop.f32.mrb[10].mxu1 }
 0x41e   :  { %v1547_v54 = vadd.f32 %v1526_v40, %v1473_v9  ;;  %v1549_v2 = vadd.f32 %v1534_v41, %v1516_v8  ;;  %v1475_v12 = vpop.f32.mrb[11].mxu0  ;;  %v1518_v58 = vpop.f32.mrb[11].mxu1 }
 0x41f   :  { %v1559_v14 = vcombine.low %v1543_v48, %v1544_v63  ;;  %v1560_v15 = vcombine.high %v1543_v48, %v1544_v63  ;;  %v1561_v16 = vcombine.low %v1545_v49, %v1546_v0  ;;  %v1562_v17 = vcombine.high %v1545_v49, %v1546_v0 }
 0x420   :  { %v1548_v53 = vadd.f32 %v1530_v43, %v1475_v12  ;;  %v1550_v59 = vadd.f32 %v1538_v45, %v1518_v58 }
 0x421   :  { %v1569_v60 = vrot.slane %v1559_v14, %v3213_v7  ;;  %v1576_v18 = vrot.slane %v1560_v15, %v3213_v7  ;;  %v1583_v39 = vrot.slane %v1561_v16, %v3213_v7  ;;  %v1590_v42 = vrot.slane %v1562_v17, %v3213_v7 }
 0x422   :  { %v1595_v44 = vcombine.low %v1547_v54, %v1548_v53  ;;  %v1596_v46 = vcombine.high %v1547_v54, %v1548_v53  ;;  %v1597_v40 = vcombine.low %v1549_v2, %v1550_v59  ;;  %v1598_v41 = vcombine.high %v1549_v2, %v1550_v59 }
 0x423   :  { %v1591_v47 = vcombine.low %v1569_v60, %v1583_v39  ;;  %v1592_v50 = vcombine.high %v1569_v60, %v1583_v39  ;;  %v1593_v51 = vcombine.low %v1576_v18, %v1590_v42  ;;  %v1594_v48 = vcombine.high %v1576_v18, %v1590_v42 }
 0x424   :  { %v1605_v49 = vrot.slane %v1595_v44, %v3213_v7  ;;  %v1612_v43 = vrot.slane %v1596_v46, %v3213_v7  ;;  %v1619_v45 = vrot.slane %v1597_v40, %v3213_v7  ;;  %v1626_v63 = vrot.slane %v1598_v41, %v3213_v7 }
 0x425   :  { %1639 = vst [vmem:[#allocation2] sm:$0xff] %v1591_v47  ;;  %1640 = vst [vmem:[#allocation2 + $0x8] sm:$0xff] %v1592_v50 }
 0x426   :  { %1641 = vst [vmem:[#allocation2 + $0x10] sm:$0xff] %v1593_v51  ;;  %1642 = vst [vmem:[#allocation2 + $0x18] sm:$0xff] %v1594_v48  ;;  %v1627_v0 = vcombine.low %v1605_v49, %v1619_v45  ;;  %v1628_v9 = vcombine.high %v1605_v49, %v1619_v45  ;;  %v1629_v8 = vcombine.low %v1612_v43, %v1626_v63 }
 0x427   :  { %v1630_v54 = vcombine.high %v1612_v43, %v1626_v63 }
 0x428   :  { %1643 = vst [vmem:[#allocation2 + $0x20] sm:$0xff] %v1627_v0  ;;  %1644 = vst [vmem:[#allocation2 + $0x28] sm:$0xff] %v1628_v9 }
 0x429   :  { %1645 = vst [vmem:[#allocation2 + $0x30] sm:$0xff] %v1629_v8  ;;  %1646 = vst [vmem:[#allocation2 + $0x38] sm:$0xff] %v1630_v54 }
 0x42a LB: > { %v2469_v2 = vcombine.high %v3523_v52, %v3533_v1  ;;  %v2471_v12 = vcombine.high %v3528_v55, %v3538_v56  ;;  %v2468_v58 = vcombine.low %v3523_v52, %v3533_v1  ;;  %v2470_v14 = vcombine.low %v3528_v55, %v3538_v56  ;;  %s2521_s12 = sshll.u32 %s2874_s11, 3  ;;  %s1984_s18 = ssub.s32 7, %s2874_s11  ;;  %s2874_s11 = sphi %s3699_s11, %s1686_s11  }
 0x42b   : > { %v2473_v15 = vcombine.high %v3543_v57, %v3553_v62  ;;  %v2475_v16 = vcombine.high %v3548_v3, %v3558_v5  ;;  %v2472_v17 = vcombine.low %v3543_v57, %v3553_v62  ;;  %v2474_v53 = vcombine.low %v3548_v3, %v3558_v5  ;;  %s1933_s17 = scalar_lea.vmem [#allocation2], %s2521_s12  ;;  %s1982_s19 = scalar_lea.vmem [#allocation3], %s2874_s11 }
 0x42c   : > { %1849 = vmatprep.subr.bf16.mxu0 %v2469_v2  ;;  %1890 = vmatprep.subr.bf16.mxu1 %v2471_v12  ;;  %v2477_v59 = vcombine.high %v3563_v6, %v3573_v10  ;;  %v2479_v60 = vcombine.high %v3568_v61, %v3578_v29  ;;  %v2882_v18 = vmov 0   ;;  %v2476_v39 = vcombine.low %v3563_v6, %v3573_v10  ;;  %s1985_s4 = scalar_lea.vmem [#allocation4], %s1984_s18  ;;  %s1686_s11 = sadd.s32 1, %s2874_s11  }
 0x42d   : > { %1850 = vmatpush1.bf16.msra.mxu0 %v2468_v58  ;;  %1891 = vmatpush1.bf16.msra.mxu1 %v2470_v14  ;;  %v2478_v42 = vcombine.low %v3568_v61, %v3578_v29  ;;  %v2481_v44 = vcombine.high %v3583_v30, %v3593_v33  ;;  %v2483_v46 = vcombine.high %v3588_v31, %v3598_v11  ;;  %p1683_p1 = scmp.ge.s32.totalorder %s1686_s11, 8  }
 0x42e   : > { %1851 = vmatprep.subr.bf16.mxu0 %v2473_v15  ;;  %1892 = vmatprep.subr.bf16.mxu1 %v2475_v16  ;;  %v2480_v40 = vcombine.low %v3583_v30, %v3593_v33  ;;  %v2482_v41 = vcombine.low %v3588_v31, %v3598_v11  ;;  %v2485_v47 = vcombine.high %v3603_v4, %v3613_v21  ;;  %v1687_v15 = vld [vmem:[#allocation5] sm:$0x3]  ;;  %v2823_v52 = vld [vmem:[%s3884_s13 + $0x8] sm:$0xff] (%p1683_p1)   ;;  %v2826_v56 = vld [vmem:[%s3885_s14 + $0x18] sm:$0xff] (%p1683_p1)  }
 0x42f   : > { %1881 = vmatprep.mubr.bf16.mxu0 %v2882_v18  ;;  %1922 = vmatprep.mubr.bf16.mxu1 %v2882_v18  ;;  %v2487_v50 = vcombine.high %v3608_v20, %v3618_v22  ;;  %v2484_v51 = vcombine.low %v3603_v4, %v3613_v21  ;;  %v2486_v48 = vcombine.low %v3608_v20, %v3618_v22  ;;  %v2824_v55 = vld [vmem:[%s3885_s14 + $0x10] sm:$0xff] (%p1683_p1)   ;;  %v2827_v57 = vld [vmem:[%s3884_s13 + $0x18] sm:$0xff] (%p1683_p1)   ;;  %v2828_v3 = vld [vmem:[%s3885_s14 + $0x20] sm:$0xff] (%p1683_p1)  }
 0x430   : > { %v2489_v49 = vcombine.high %v3623_v23, %v3633_v25  ;;  %v2491_v43 = vcombine.high %v3628_v24, %v3638_v26  ;;  %v2488_v45 = vcombine.low %v3623_v23, %v3633_v25  ;;  %v2490_v63 = vcombine.low %v3628_v24, %v3638_v26  ;;  %v2825_v1 = vld [vmem:[%s3884_s13 + $0x10] sm:$0xff] (%p1683_p1)   ;;  %v2829_v62 = vld [vmem:[%s3884_s13 + $0x20] sm:$0xff] (%p1683_p1)   ;;  %v2830_v5 = vld [vmem:[%s3885_s14 + $0x28] sm:$0xff] (%p1683_p1)  }
 0x431   : > { %1852 = vmatpush1.bf16.msra.mxu0 %v2472_v17  ;;  %1893 = vmatpush1.bf16.msra.mxu1 %v2474_v53  ;;  %v2493_v0 = vcombine.high %v3643_v27, %v3653_v32  ;;  %v2495_v9 = vcombine.high %v3648_v28, %v3658_v34  ;;  %v2492_v8 = vcombine.low %v3643_v27, %v3653_v32  ;;  %v2831_v29 = vld [vmem:[%s3884_s13 + $0x28] sm:$0xff] (%p1683_p1)  }
 0x432   : > { %1853 = vmatprep.subr.bf16.mxu0 %v2477_v59  ;;  %1894 = vmatprep.subr.bf16.mxu1 %v2479_v60  ;;  %v2494_v54 = vcombine.low %v3648_v28, %v3658_v34  ;;  %v2497_v2 = vcombine.high %v3663_v35, %v3673_v37  ;;  %v2499_v12 = vcombine.high %v3668_v36, %v3678_v38 }
 0x433   : > { %v2496_v58 = vcombine.low %v3663_v35, %v3673_v37  ;;  %v2498_v14 = vcombine.low %v3668_v36, %v3678_v38  ;;  %v1688_v16 = vpack.c.bf16 %v1687_v15, %v1687_v15 }
 0x435   : > { %1854 = vmatpush1.bf16.msra.mxu0 %v2476_v39  ;;  %1895 = vmatpush1.bf16.msra.mxu1 %v2478_v42 }
 0x436   : > { %1855 = vmatprep.subr.bf16.mxu0 %v2481_v44  ;;  %1896 = vmatprep.subr.bf16.mxu1 %v2483_v46 }
 0x439   : > { %1856 = vmatpush1.bf16.msra.mxu0 %v2480_v40  ;;  %1897 = vmatpush1.bf16.msra.mxu1 %v2482_v41 }
 0x43a   : > { %1857 = vmatprep.subr.bf16.mxu0 %v2485_v47  ;;  %1898 = vmatprep.subr.bf16.mxu1 %v2487_v50  ;;  %v1934_v50 = vld [vmem:[%s1933_s17] sm:$0xff] }
 0x43d   : > { %1858 = vmatpush1.bf16.msra.mxu0 %v2484_v51  ;;  %1899 = vmatpush1.bf16.msra.mxu1 %v2486_v48 }
 0x43e   : > { %1859 = vmatprep.subr.bf16.mxu0 %v2489_v49  ;;  %1900 = vmatprep.subr.bf16.mxu1 %v2491_v43 }
 0x441   : > { %1860 = vmatpush1.bf16.msra.mxu0 %v2488_v45  ;;  %1901 = vmatpush1.bf16.msra.mxu1 %v2490_v63 }
 0x442   : > { %1861 = vmatprep.subr.bf16.mxu0 %v2493_v0  ;;  %1902 = vmatprep.subr.bf16.mxu1 %v2495_v9  ;;  %v1968_v9 = vld [vmem:[#allocation6] sm:$0x3] }
 0x445   : > { %1862 = vmatpush1.bf16.msra.mxu0 %v2492_v8  ;;  %1903 = vmatpush1.bf16.msra.mxu1 %v2494_v54 }
 0x446   : > { %1863 = vmatprep.subr.bf16.mxu0 %v2497_v2  ;;  %1904 = vmatprep.subr.bf16.mxu1 %v2499_v12 }
 0x449   : > { %1864 = vmatpush1.bf16.msra.mxu0 %v2496_v58  ;;  %1905 = vmatpush1.bf16.msra.mxu1 %v2498_v14 }
 0x44a   :  { %2656 = vmatprep.subr.bf16.mxu0 (%p1683_p1), %v2877_v19  ;;  %2676 = vmatprep.subr.bf16.mxu1 (%p1683_p1), %v2877_v19 }
 0x44c   : > { %1882 = vmatmul.mubr.bf16.vlgmr.msra.gmra.mrb[0].mxu0 %v1688_v16  ;;  %1923 = vmatmul.mubr.bf16.vlgmr.msra.gmra.mrb[0].mxu1 %v1688_v16 }
 0x44d   :  { %2672 = vmatprep.mubr.msk.bf16.mxu0 (%p1683_p1), %vm2880_vm1, %v2877_v19  ;;  %2692 = vmatprep.mubr.msk.bf16.mxu1 (%p1683_p1), %vm2880_vm1, %v2877_v19 }
 0x51f   : > { %v1883_v17 = vpop.f32.mrb[0].mxu0  ;;  %v1924_v53 = vpop.f32.mrb[0].mxu1 }
 0x520   : > { %v1885_v59 = vpop.f32.mrb[1].mxu0  ;;  %v1926_v60 = vpop.f32.mrb[1].mxu1 }
 0x521   : > { %v1939_v18 = vcombine.low %v1883_v17, %v1885_v59  ;;  %v1940_v39 = vcombine.low %v1924_v53, %v1926_v60  ;;  %v1887_v42 = vpop.f32.mrb[2].mxu0  ;;  %v1928_v44 = vpop.f32.mrb[2].mxu1  ;;  %v2820_v53 = vld [vmem:[%s3885_s14] sm:$0xff] (%p1683_p1)  }
 0x522   : > { %v1888_v46 = vpop.f32.mrb[3].mxu0  ;;  %v1929_v40 = vpop.f32.mrb[3].mxu1  ;;  %v2821_v59 = vld [vmem:[%s3884_s13] sm:$0xff] (%p1683_p1)   ;;  %2657 = vmatpush3.bf16.msra.mxu0 (%p1683_p1), %v2820_v53  ;;  %v2832_v44 = vld [vmem:[%s3885_s14 + $0x30] sm:$0xff] (%p1683_p1)  }
 0x523   : > { %v1947_v41 = vrot.slane %v1939_v18, %v3213_v7  ;;  %v1954_v47 = vrot.slane %v1940_v39, %v3213_v7  ;;  %v2822_v7 = vld [vmem:[%s3885_s14 + $0x8] sm:$0xff] (%p1683_p1)   ;;  %2677 = vmatpush3.bf16.msra.mxu1 (%p1683_p1), %v2821_v59  ;;  %2658 = vmatprep.subr.bf16.mxu0 (%p1683_p1), %v2877_v19 }
 0x524   :  { %2678 = vmatprep.subr.bf16.mxu1 (%p1683_p1), %v2877_v19 }
 0x525   : > { %v1955_v51 = vcombine.low %v1947_v41, %v1954_v47 }
 0x526   :  { %2659 = vmatpush3.bf16.msra.mxu0 (%p1683_p1), %v2822_v7 }
 0x527   : > { %v1957_v48 = vadd.f32 %v1955_v51, %v1934_v50  ;;  %2679 = vmatpush3.bf16.msra.mxu1 (%p1683_p1), %v2823_v52  ;;  %2660 = vmatprep.subr.bf16.mxu0 (%p1683_p1), %v2877_v19  ;;  %v2833_v50 = vld [vmem:[%s3884_s13 + $0x30] sm:$0xff] (%p1683_p1)  }
 0x528   :  { %2680 = vmatprep.subr.bf16.mxu1 (%p1683_p1), %v2877_v19 }
 0x529   : > { %v2502_v49 = vmul.f32 -1.442695, %v1957_v48  ;;  %v1965_v63 = vrot.slane %v1957_v48, 6 }
 0x52a   :  { %2661 = vmatpush3.bf16.msra.mxu0 (%p1683_p1), %v2824_v55 }
 0x52b   : > { %2812 = vpow2.f32 %v2502_v49  ;;  %2681 = vmatpush3.bf16.msra.mxu1 (%p1683_p1), %v2825_v1  ;;  %2662 = vmatprep.subr.bf16.mxu0 (%p1683_p1), %v2877_v19 }
 0x52c   :  { %2682 = vmatprep.subr.bf16.mxu1 (%p1683_p1), %v2877_v19 }
 0x52e   :  { %2663 = vmatpush3.bf16.msra.mxu0 (%p1683_p1), %v2826_v56 }
 0x52f   :  { %2683 = vmatpush3.bf16.msra.mxu1 (%p1683_p1), %v2827_v57  ;;  %2664 = vmatprep.subr.bf16.mxu0 (%p1683_p1), %v2877_v19 }
 0x530   :  { %2684 = vmatprep.subr.bf16.mxu1 (%p1683_p1), %v2877_v19 }
 0x532   :  { %2665 = vmatpush3.bf16.msra.mxu0 (%p1683_p1), %v2828_v3 }
 0x533   :  { %2685 = vmatpush3.bf16.msra.mxu1 (%p1683_p1), %v2829_v62  ;;  %2666 = vmatprep.subr.bf16.mxu0 (%p1683_p1), %v2877_v19 }
 0x534   :  { %2686 = vmatprep.subr.bf16.mxu1 (%p1683_p1), %v2877_v19 }
 0x535   : > { %v2813_v43 = vpop.eup %2812 }
 0x536   : > { %v1961_v45 = vadd.f32 1.0, %v2813_v43  ;;  %2667 = vmatpush3.bf16.msra.mxu0 (%p1683_p1), %v2830_v5 }
 0x537   :  { %2687 = vmatpush3.bf16.msra.mxu1 (%p1683_p1), %v2831_v29  ;;  %2668 = vmatprep.subr.bf16.mxu0 (%p1683_p1), %v2877_v19 }
 0x538   : > { %2814 = vrcp.f32 %v1961_v45  ;;  %2688 = vmatprep.subr.bf16.mxu1 (%p1683_p1), %v2877_v19 }
 0x539   : > { %2816 = vtanh.f32 %v1965_v63 }
 0x53a   :  { %2669 = vmatpush3.bf16.msra.mxu0 (%p1683_p1), %v2832_v44 }
 0x53b   :  { %2689 = vmatpush3.bf16.msra.mxu1 (%p1683_p1), %v2833_v50  ;;  %2670 = vmatprep.subr.bf16.mxu0 (%p1683_p1), %v2877_v19 }
 0x53c   :  { %2690 = vmatprep.subr.bf16.mxu1 (%p1683_p1), %v2877_v19 }
 0x542   : > { %v2815_v0 = vpop.eup %2814 }
 0x543   : > { %v1970_v8 = vrot.slane %v2815_v0, 2  ;;  %v2817_v54 = vpop.eup %2816  ;;  %v1976_v14 = vrot.slane %v2815_v0, 4 }
 0x544   : > { %v1973_v12 = vmul.f32 %v2817_v54, %v2815_v0  ;;  %v2834_v0 = vld [vmem:[%s3885_s14 + $0x38] sm:$0xff] (%p1683_p1)  }
 0x545   : > { %v1972_v2 = vmul.f32 %v1970_v8, %v1968_v9  ;;  %v2835_v54 = vld [vmem:[%s3884_s13 + $0x38] sm:$0xff] (%p1683_p1)   ;;  %2671 = vmatpush3.bf16.msra.mxu0 (%p1683_p1), %v2834_v0  ;;  %s2883_s13 = smov (%p1683_p1), [#allocation7]  }
 0x546   :  { %2691 = vmatpush3.bf16.msra.mxu1 (%p1683_p1), %v2835_v54  ;;  %s2345_s25 = sshll.u32 (%p1683_p1), %s2883_s13, 4  ;;  %s2346_s25 = int_to_ptr.vmem [resolvable:$true] %s2345_s25 }
 0x547   : > { %v1974_v58 = vadd.f32 %v1973_v12, %v1972_v2  ;;  %s2836_s2 = scalar_lea.vmem (%p1683_p1), %s2346_s25, 256  ;;  %p2841_p3 = scmp.lt.s32.totalorder (%p1683_p1), %s2346_s25, %s2346_s25 }
 0x548   :  { %p2837_p2 = scmp.ne.s32.totalorder (%p1683_p1), %s2346_s25, %s2836_s2  ;;  %p2842_p4 = scmp.lt.s32.totalorder (%p1683_p1), %s2836_s2, %s2836_s2 }
 0x549   : > { %2818 = vtanh.f32 %v1974_v58  ;;  %1979 = vst [vmem:[#allocation6] sm:$0x3] %v1974_v58 }
 0x54a   :  { %p2843_p5 = por (%p1683_p1), %p2842_p4, %p2841_p3 }
 0x54c   :  { %p2844_p6 = pnand (%p1683_p1), %p2843_p5, %p2837_p2 }
 0x552   :  { %1685 = sbr.rel (!%p1683_p1) target bundleno = 1066 (0x42a), region = 115 }
 0x553   : > { %v2819_v15 = vpop.eup %2818 }
 0x554   : > { %v1978_v16 = vmul.f32 %v2819_v15, %v1976_v14 }
 0x556   : > { %1980 = vst [vmem:[#allocation5] sm:$0x3] %v1978_v16  ;;  %v1981_v17 = vpack.c.bf16 %v1978_v16, %v1978_v16  ;;  %v2519_v16 = vld [vmem:[%s3886_s15] ss:$0 sm:$0xff] (%p1683_p1) }
 0x558   : > { %1983 = vst [vmem:[%s1982_s19] sm:$0x1] %v1981_v17  ;;  %1986 = vst [vmem:[%s1985_s4] sm:$0x1] %v1981_v17 }
 0x55f   :  { %v1995_v6 = vld [vmem:[#allocation4] sm:$0x1]  ;;  %v1996_v61 = vld [vmem:[#allocation4 + $0x1] sm:$0x1]  ;;  %v1997_v10 = vld [vmem:[#allocation4 + $0x2] sm:$0x1] }
 0x560   :  { %v1998_v30 = vld [vmem:[#allocation4 + $0x3] sm:$0x1]  ;;  %v1999_v31 = vld [vmem:[#allocation4 + $0x4] sm:$0x1]  ;;  %v2000_v33 = vld [vmem:[#allocation4 + $0x5] sm:$0x1]  ;;  %v2043_v11 = vcombine.low %v1995_v6, %v1996_v61 }
 0x561   :  { %v2001_v4 = vld [vmem:[#allocation4 + $0x6] sm:$0x1]  ;;  %v2002_v20 = vld [vmem:[#allocation4 + $0x7] sm:$0x1]  ;;  %v2044_v21 = vcombine.low %v1997_v10, %v1998_v30  ;;  %v2045_v22 = vcombine.low %v1999_v31, %v2000_v33  ;;  %v1987_v23 = vld [vmem:[#allocation3] sm:$0x1] }
 0x562   :  { %v2046_v24 = vcombine.low %v2001_v4, %v2002_v20  ;;  %v2053_v25 = vrot.slane %v2043_v11, %v3402_v13  ;;  %v1988_v26 = vld [vmem:[#allocation3 + $0x1] sm:$0x1]  ;;  %v1989_v27 = vld [vmem:[#allocation3 + $0x2] sm:$0x1]  ;;  %v1990_v28 = vld [vmem:[#allocation3 + $0x3] sm:$0x1] }
 0x563   :  { %v2060_v32 = vrot.slane %v2044_v21, %v3402_v13  ;;  %v2067_v34 = vrot.slane %v2045_v22, %v3402_v13  ;;  %v1991_v35 = vld [vmem:[#allocation3 + $0x4] sm:$0x1]  ;;  %v1992_v36 = vld [vmem:[#allocation3 + $0x5] sm:$0x1]  ;;  %v1993_v37 = vld [vmem:[#allocation3 + $0x6] sm:$0x1]  ;;  %v2190_v38 = vcombine.low %v1987_v23, %v1988_v26  ;;  %v2191_v60 = vcombine.low %v1989_v27, %v1990_v28 }
 0x564   :  { %v2074_v18 = vrot.slane %v2046_v24, %v3402_v13  ;;  %v1994_v39 = vld [vmem:[#allocation3 + $0x7] sm:$0x1]  ;;  %v2192_v42 = vcombine.low %v1991_v35, %v1992_v36 }
 0x565   :  { %v2075_v46 = vcombine.low %v2053_v25, %v2060_v32  ;;  %v2193_v40 = vcombine.low %v1993_v37, %v1994_v39  ;;  %v2200_v41 = vrot.slane %v2190_v38, %v3402_v13  ;;  %v2207_v47 = vrot.slane %v2191_v60, %v3402_v13 }
 0x566   :  { %v2076_v51 = vcombine.low %v2067_v34, %v2074_v18  ;;  %v2214_v48 = vrot.slane %v2192_v42, %v3402_v13 }
 0x567   :  { %v2221_v49 = vrot.slane %v2193_v40, %v3402_v13  ;;  %v2222_v43 = vcombine.low %v2200_v41, %v2207_v47  ;;  %v2083_v45 = vrot.slane %v2075_v46, %v3402_v13 }
 0x568   :  { %v2090_v63 = vrot.slane %v2076_v51, %v3402_v13 }
 0x569   :  { %v2223_v9 = vcombine.low %v2214_v48, %v2221_v49  ;;  %v2230_v8 = vrot.slane %v2222_v43, %v3402_v13 }
 0x56a   :  { %v2091_v12 = vcombine.low %v2083_v45, %v2090_v63 }
 0x56b   :  { %v2237_v2 = vrot.slane %v2223_v9, %v3402_v13 }
 0x56c   :  { %2673 = vmatmul.mubr.bf16.vlgmr.msra.gmra.mrb[0].mxu0 %v2091_v12 }
 0x56d   :  { %v2238_v58 = vcombine.low %v2230_v8, %v2237_v2 }
 0x56f   :  { %2693 = vmatmul.mubr.bf16.vlgmr.msra.gmra.mrb[0].mxu1 %v2238_v58 }
 0x63f   :  { %v2175_v14 = vpop.f32.mrb[0].mxu0 }
 0x640   :  { %v2674_v17 = vpop.f32.mrb[1].mxu0 }
 0x641   :  { %v2178_v7 = vpop.f32.mrb[2].mxu0 }
 0x642   :  { %v2322_v15 = vpop.f32.mrb[0].mxu1  ;;  %v2675_v13 = vpop.f32.mrb[3].mxu0 }
 0x643   :  { %v2323_v53 = vadd.f32 %v2322_v15, %v2175_v14  ;;  %v2694_v59 = vpop.f32.mrb[1].mxu1 }
 0x644   :  { %v2325_v19 = vpop.f32.mrb[2].mxu1 }
 0x645   :  { %v2336_v52 = vadd.f32 %v2519_v16, %v2323_v53  ;;  %v2326_v55 = vadd.f32 %v2325_v19, %v2178_v7  ;;  %v2695_v1 = vpop.f32.mrb[3].mxu1 }
 0x647   :  { %2338 = vst [vmem:[#allocation7] sm:$0xff] %v2336_v52  ;;  %v2337_v56 = vadd.f32 %v2519_v16, %v2326_v55 }
 0x649   :  { %2339 = vst [vmem:[#allocation7 + $0x8] sm:$0xff] %v2337_v56 }
 0x64a   :  { %2847 = shalt.err (!%p2844_p6)
}
 0x64b   :  { %s2848_s9 = scalar_lea.hbm %s3887_s16, 256 }
 0x64c   :  { %p2849_p7 = scmp.ne.s32.totalorder %s3887_s16, %s2848_s9  ;;  %p2852_p8 = scmp.lt.u32.totalorder %s2848_s9, %s3887_s16 }
 0x64e   :  { %p2854_p9 = pnand %p2852_p8, %p2849_p7 }
 0x650   :  { %2857 = shalt.err (!%p2854_p9)
}
 0x651   :  { %s2884_s30 = smov 128   ;;  %s2885_s1 = smov 8  }
 0x652   :  { %2351 = dma.vmem_to_hbm [thread:$0]  %s2346_s25, 256, %s3887_s16, [#allocation8], %s2884_s30, %s2884_s30, %s2885_s1  }
 0x653   :  { %2866 = dma.done.wait [#allocation8], 256  }
 0x654   :  { %2867 = vsyncadd [#allocation8], 4294967040 }
 0x655   :  { %2355 = vsyncpa [#allocation8], 1 }

</bundles_post_ra>
